<compile_context>
chip_gen: v7x
topology: tpu7x:2x2x1
jax: 0.10.0
libtpu: 0.0.40
codegen_flags: <defaults>
</compile_context>

<pallas_src>
import functools

import jax
import jax.numpy as jnp
from jax.experimental import pallas as pl
from jax.experimental.pallas import tpu as pltpu

EPS = 1e-5


def _vmem_limit_bytes():
    """~75% of per-core VMEM: ~96 MiB on v5e/v6e (128 MiB), ~48 MiB on v7x (64 MiB)."""
    mib = 1024 * 1024
    try:
        cap = int(pltpu.get_tpu_info().vmem_capacity_bytes)
        return min(max((3 * cap) // 4, 32 * mib), 112 * mib)
    except Exception:
        return 48 * mib  # safe on every generation (<= v7x physical, >= scoped default)


def _conv3x3_reflect_instance_norm(x, w_ref, halo_ref, *, width, margin):
    """Reflect-pad(1) 3x3 conv fused with affine-free InstanceNorm on a (C, HW) tile.

    x:        (C, H*W) f32 value, spatial positions flattened on the lane axis.
    w_ref:    (C_out, 9*C_in) VMEM ref, tap-major K order [(kh*3+kw)*C_in + c_in].
    halo_ref: (C, margin + H*W + margin) f32 VMEM scratch.  The tile is stored once
              at a lane-aligned offset; the 8 shifted neighbour views are plain
              offset window reads (no reshapes, no rolls, no im2col slab).
    Returns   (C, H*W) f32, normalized per channel over all spatial positions.
    """
    C, HW = x.shape
    W = width

    # Stage the tile once (margin is a multiple of 128 -> lane-aligned store).
    halo_ref[:, margin:margin + HW] = x

    def rd(dh, dw):
        # Neighbour value x[h+dh, w+dw] at every flattened position (wrap/garbage
        # at boundaries is always replaced by the reflection selects below).
        if dh == 0 and dw == 0:
            return x
        off = margin + dh * W + dw
        return halo_ref[:, off:off + HW]

    # Boundary masks on the flattened lane axis.
    pos = jax.lax.broadcasted_iota(jnp.int32, (C, HW), 1)
    w_first = (pos % W) == 0            # column 0 of each row
    w_last = (pos % W) == (W - 1)       # column W-1 of each row
    h_first = pos < W                   # first row
    h_last = pos >= (HW - W)            # last row

    # Column reflection first (col -1 -> col 1, col W -> col W-2) ...
    cr = {}
    for dh in (-1, 0, 1):
        cr[(dh, -1)] = jnp.where(w_first, rd(dh, 1), rd(dh, -1))
        cr[(dh, 0)] = rd(dh, 0)
        cr[(dh, 1)] = jnp.where(w_last, rd(dh, -1), rd(dh, 1))

    # ... then row reflection (row -1 -> row 1, row H -> row H-2); corners compose
    # exactly like sequential ReflectionPad2d.  Each tap feeds an accumulated
    # (C_out, C_in) @ (C_in, HW) MXU matmul with a lane-dense N = HW.
    acc = jnp.zeros((C, HW), jnp.float32)
    for kh in range(3):
        for kw in range(3):
            dh, dw = kh - 1, kw - 1
            if dh == -1:
                tap = jnp.where(h_first, cr[(1, dw)], cr[(-1, dw)])
            elif dh == 1:
                tap = jnp.where(h_last, cr[(-1, dw)], cr[(1, dw)])
            else:
                tap = cr[(0, dw)]
            t = kh * 3 + kw
            w_tap = w_ref[:, t * C:(t + 1) * C]             # (C_out, C_in)
            acc = acc + jnp.dot(w_tap, tap, preferred_element_type=jnp.float32)

    # Single-pass InstanceNorm (biased variance, eps=1e-5, affine-free).  The conv
    # bias is intentionally omitted: the per-channel mean subtraction cancels it.
    inv_n = jnp.float32(1.0 / HW)
    mean = jnp.sum(acc, axis=1, keepdims=True) * inv_n
    var = jnp.maximum(jnp.sum(acc * acc, axis=1, keepdims=True) * inv_n
                      - mean * mean, 0.0)
    return (acc - mean) * jax.lax.rsqrt(var + EPS)


def _resnet_block_kernel(x_ref, w1_ref, w2_ref, out_ref, halo_ref, *, width, margin):
    """[reflect+conv3x3+IN+ReLU] -> [reflect+conv3x3+IN] -> + x, for one image."""
    C, HW = out_ref.shape

    # Deterministic margins (they are read -- but never selected -- by the window
    # reads above).  Two tiny aligned stores per grid step.
    halo_ref[:, :margin] = jnp.zeros((C, margin), jnp.float32)
    halo_ref[:, margin + HW:] = jnp.zeros((C, margin), jnp.float32)

    h = _conv3x3_reflect_instance_norm(
        x_ref[...].astype(jnp.float32), w1_ref, halo_ref, width=width, margin=margin)
    h = jnp.maximum(h, 0.0)                                   # ReLU, never leaves VMEM
    y = _conv3x3_reflect_instance_norm(h, w2_ref, halo_ref, width=width, margin=margin)

    # Residual: re-read the resident input block at the point of use instead of
    # keeping it live across both conv stages.
    out_ref[...] = (x_ref[...].astype(jnp.float32) + y).astype(out_ref.dtype)


def _resnet_block_pallas(x_flat, w1t, w2t, *, width):
    N, C, HW = x_flat.shape
    # Halo margin: >= W+1 on each side, rounded to a multiple of 128 so the tile
    # store into the halo scratch is lane-aligned.
    margin = ((width + 1 + 127) // 128) * 128
    kernel = functools.partial(_resnet_block_kernel, width=width, margin=margin)
    return pl.pallas_call(
        kernel,
        out_shape=jax.ShapeDtypeStruct((N, C, HW), x_flat.dtype),
        grid_spec=pltpu.PrefetchScalarGridSpec(
            num_scalar_prefetch=0,
            grid=(N,),
            in_specs=[
                pl.BlockSpec((None, C, HW), lambda n: (n, 0, 0)),   # one image / step
                pl.BlockSpec((C, 9 * C), lambda n: (0, 0)),         # conv1 weights (resident)
                pl.BlockSpec((C, 9 * C), lambda n: (0, 0)),         # conv2 weights (resident)
            ],
            out_specs=pl.BlockSpec((None, C, HW), lambda n: (n, 0, 0)),  # lane-dense in HW
            scratch_shapes=[
                pltpu.VMEM((C, 2 * margin + HW), jnp.float32),      # halo-padded tile
            ],
        ),
        compiler_params=pltpu.CompilerParams(
            dimension_semantics=("parallel",),      # megacore / dual-TC shard the batch
            vmem_limit_bytes=_vmem_limit_bytes(),
        ),
    )(x_flat, w1t, w2t)


def resnet_block_forward(x_nchw, w1, b1, w2, b2):
    """ResnetBlock forward (padding_type='reflect', InstanceNorm2d, use_relu=False).

    x_nchw is (N, C, H, W), exactly the PyTorch layout -- no NCHW<->NHWC transposes
    (each would cost a full extra HBM read+write).  w1/w2 are HWIO (3,3,C,C); the
    conv biases b1/b2 are cancelled exactly by the affine-free InstanceNorm
    (track_running_stats=False), so they are never shipped to the kernel.
    """
    del b1, b2
    N, C, H, W = x_nchw.shape
    assert H >= 2 and W >= 2, "ReflectionPad2d(1) needs H >= 2 and W >= 2"
    # HWIO (3,3,Cin,Cout) -> (Cout, 9*Cin), tap-major K order (tiny one-off op).
    w1t = jnp.transpose(w1, (3, 0, 1, 2)).reshape(C, 9 * C)
    w2t = jnp.transpose(w2, (3, 0, 1, 2)).reshape(C, 9 * C)
    # (N,C,H,W) <-> (N,C,H*W) are metadata-only reshapes: no HBM pass.
    out = _resnet_block_pallas(x_nchw.reshape(N, C, H * W), w1t, w2t, width=W)
    return out.reshape(N, C, H, W)


def _reference_forward(x_nchw, w1, b1, w2, b2):
    """Pure-JAX reference (lax conv, WITH bias) for the correctness check."""
    x = jnp.transpose(x_nchw, (0, 2, 3, 1))

    def conv(xx, w, b):
        xp = jnp.pad(xx, ((0, 0), (1, 1), (1, 1), (0, 0)), mode="reflect")
        y = jax.lax.conv_general_dilated(
            xp, w, (1, 1), "VALID",
            dimension_numbers=("NHWC", "HWIO", "NHWC"))
        return y + b.reshape(1, 1, 1, -1)

    def inorm(y):
        m = jnp.mean(y, axis=(1, 2), keepdims=True)
        v = jnp.mean((y - m) ** 2, axis=(1, 2), keepdims=True)
        return (y - m) * jax.lax.rsqrt(v + EPS)

    h = jax.nn.relu(inorm(conv(x, w1, b1)))
    h2 = inorm(conv(h, w2, b2))
    return jnp.transpose(x + h2, (0, 3, 1, 2))


if __name__ == "__main__":
    N, C, H, W = 2, 4, 16, 16
    key = jax.random.PRNGKey(0)
    kx, kw1, kb1, kw2, kb2 = jax.random.split(key, 5)

    x = jax.random.normal(kx, (N, C, H, W), dtype=jnp.float32)
    # Deterministic synthetic Conv2d params (HWIO layout), kernel_size=3, with bias.
    w1 = jax.random.normal(kw1, (3, 3, C, C), dtype=jnp.float32) * 0.1
    b1 = jax.random.normal(kb1, (C,), dtype=jnp.float32) * 0.1
    w2 = jax.random.normal(kw2, (3, 3, C, C), dtype=jnp.float32) * 0.1
    b2 = jax.random.normal(kb2, (C,), dtype=jnp.float32) * 0.1

    out = jax.block_until_ready(resnet_block_forward(x, w1, b1, w2, b2))
    ref = jax.block_until_ready(_reference_forward(x, w1, b1, w2, b2))

    assert out.shape == (N, C, H, W)
    assert jnp.allclose(out, ref, atol=2e-3, rtol=2e-3), "mismatch vs reference"

    print("KERNEL_OK")
</pallas_src>

<mosaic_0001>
module attributes {stable_mosaic.version = 11 : i64} {
  func.func @_resnet_block_kernel(%arg0: i32, %arg1: memref<1x4x256xf32, #tpu.memory_space<vmem>>, %arg2: memref<4x36xf32, #tpu.memory_space<vmem>>, %arg3: memref<4x36xf32, #tpu.memory_space<vmem>>, %arg4: memref<1x4x256xf32, #tpu.memory_space<vmem>>, %arg5: memref<4x512xf32, #tpu.memory_space<vmem>>) attributes {dimension_semantics = [#tpu.dimension_semantics<parallel>], iteration_bounds = array<i64: 2>, scalar_prefetch = 0 : i64, scratch_operands = 1 : i64, tpu.core_type = #tpu.core_type<tc>, window_params = [{transform_indices = @transform_0, window_bounds = array<i64: 1, 4, 256>}, {pipeline_mode = #tpu.pipeline_mode<synchronous>, transform_indices = @transform_1, window_bounds = array<i64: 4, 36>}, {pipeline_mode = #tpu.pipeline_mode<synchronous>, transform_indices = @transform_2, window_bounds = array<i64: 4, 36>}, {transform_indices = @transform_3, window_bounds = array<i64: 1, 4, 256>}]} {
    %cst = arith.constant 0.000000e+00 : f32
    %0 = vector.broadcast %cst : f32 to vector<4x128xf32>
    %c0 = arith.constant 0 : index
    %c0_0 = arith.constant 0 : index
    %1 = vector.load %arg5[%c0, %c0_0] : memref<4x512xf32, #tpu.memory_space<vmem>>, vector<4x128xf32>
    tpu.vector_store %arg5[%c0, %c0_0], %0 {strides = array<i32>} : memref<4x512xf32, #tpu.memory_space<vmem>>, vector<4x128xf32>,
    %cst_1 = arith.constant 0.000000e+00 : f32
    %2 = vector.broadcast %cst_1 : f32 to vector<4x128xf32>
    %c0_2 = arith.constant 0 : index
    %c384 = arith.constant 384 : index
    %3 = vector.load %arg5[%c0_2, %c384] : memref<4x512xf32, #tpu.memory_space<vmem>>, vector<4x128xf32>
    tpu.vector_store %arg5[%c0_2, %c384], %2 {strides = array<i32>} : memref<4x512xf32, #tpu.memory_space<vmem>>, vector<4x128xf32>,
    %c0_3 = arith.constant 0 : index
    %c0_4 = arith.constant 0 : index
    %c0_5 = arith.constant 0 : index
    %4 = vector.load %arg1[%c0_3, %c0_4, %c0_5] : memref<1x4x256xf32, #tpu.memory_space<vmem>>, vector<1x4x256xf32>
    %5 = vector.shape_cast %4 : vector<1x4x256xf32> to vector<4x256xf32>
    %c0_6 = arith.constant 0 : index
    %c128 = arith.constant 128 : index
    %6 = vector.load %arg5[%c0_6, %c128] : memref<4x512xf32, #tpu.memory_space<vmem>>, vector<4x256xf32>
    tpu.vector_store %arg5[%c0_6, %c128], %5 {strides = array<i32>} : memref<4x512xf32, #tpu.memory_space<vmem>>, vector<4x256xf32>,
    %7 = tpu.iota {dimensions = array<i32: 1>} : vector<4x256xi32>
    %c16_i32 = arith.constant 16 : i32
    %c0_i32 = arith.constant 0 : i32
    %8 = arith.cmpi eq, %c16_i32, %c0_i32 : i32
    %c1_i32 = arith.constant 1 : i32
    %9 = arith.select %8, %c1_i32, %c16_i32 : i32
    %10 = vector.broadcast %9 : i32 to vector<4x256xi32>
    %11 = arith.remsi %7, %10 : vector<4x256xi32>
    %c0_i32_7 = arith.constant 0 : i32
    %12 = vector.broadcast %c0_i32_7 : i32 to vector<4x256xi32>
    %13 = arith.cmpi ne, %11, %12 : vector<4x256xi32>
    %c0_i32_8 = arith.constant 0 : i32
    %14 = vector.broadcast %c0_i32_8 : i32 to vector<4x256xi32>
    %15 = arith.cmpi slt, %11, %14 : vector<4x256xi32>
    %c0_i32_9 = arith.constant 0 : i32
    %16 = arith.cmpi slt, %9, %c0_i32_9 : i32
    %17 = vector.broadcast %16 : i1 to vector<4x256xi1>
    %18 = vector.broadcast %17 : vector<4x256xi1> to vector<4x256xi1>
    %19 = arith.xori %15, %18 : vector<4x256xi1>
    %20 = arith.andi %19, %13 : vector<4x256xi1>
    %21 = vector.broadcast %9 : i32 to vector<4x256xi32>
    %22 = arith.addi %11, %21 : vector<4x256xi32>
    %23 = arith.select %20, %22, %11 : vector<4x256xi1>, vector<4x256xi32>
    %c0_i32_10 = arith.constant 0 : i32
    %24 = vector.broadcast %c0_i32_10 : i32 to vector<4x256xi32>
    %25 = arith.cmpi eq, %23, %24 : vector<4x256xi32>
    %c16_i32_11 = arith.constant 16 : i32
    %c0_i32_12 = arith.constant 0 : i32
    %26 = arith.cmpi eq, %c16_i32_11, %c0_i32_12 : i32
    %c1_i32_13 = arith.constant 1 : i32
    %27 = arith.select %26, %c1_i32_13, %c16_i32_11 : i32
    %28 = vector.broadcast %27 : i32 to vector<4x256xi32>
    %29 = arith.remsi %7, %28 : vector<4x256xi32>
    %c0_i32_14 = arith.constant 0 : i32
    %30 = vector.broadcast %c0_i32_14 : i32 to vector<4x256xi32>
    %31 = arith.cmpi ne, %29, %30 : vector<4x256xi32>
    %c0_i32_15 = arith.constant 0 : i32
    %32 = vector.broadcast %c0_i32_15 : i32 to vector<4x256xi32>
    %33 = arith.cmpi slt, %29, %32 : vector<4x256xi32>
    %c0_i32_16 = arith.constant 0 : i32
    %34 = arith.cmpi slt, %27, %c0_i32_16 : i32
    %35 = vector.broadcast %34 : i1 to vector<4x256xi1>
    %36 = vector.broadcast %35 : vector<4x256xi1> to vector<4x256xi1>
    %37 = arith.xori %33, %36 : vector<4x256xi1>
    %38 = arith.andi %37, %31 : vector<4x256xi1>
    %39 = vector.broadcast %27 : i32 to vector<4x256xi32>
    %40 = arith.addi %29, %39 : vector<4x256xi32>
    %41 = arith.select %38, %40, %29 : vector<4x256xi1>, vector<4x256xi32>
    %c15_i32 = arith.constant 15 : i32
    %42 = vector.broadcast %c15_i32 : i32 to vector<4x256xi32>
    %43 = arith.cmpi eq, %41, %42 : vector<4x256xi32>
    %c16_i32_17 = arith.constant 16 : i32
    %44 = vector.broadcast %c16_i32_17 : i32 to vector<4x256xi32>
    %45 = arith.cmpi slt, %7, %44 : vector<4x256xi32>
    %c240_i32 = arith.constant 240 : i32
    %46 = vector.broadcast %c240_i32 : i32 to vector<4x256xi32>
    %47 = arith.cmpi sge, %7, %46 : vector<4x256xi32>
    %c0_18 = arith.constant 0 : index
    %c113 = arith.constant 113 : index
    %48 = vector.load %arg5[%c0_18, %c113] : memref<4x512xf32, #tpu.memory_space<vmem>>, vector<4x256xf32>
    %c0_19 = arith.constant 0 : index
    %c111 = arith.constant 111 : index
    %49 = vector.load %arg5[%c0_19, %c111] : memref<4x512xf32, #tpu.memory_space<vmem>>, vector<4x256xf32>
    %50 = arith.select %25, %48, %49 : vector<4x256xi1>, vector<4x256xf32>
    %c0_20 = arith.constant 0 : index
    %c112 = arith.constant 112 : index
    %51 = vector.load %arg5[%c0_20, %c112] : memref<4x512xf32, #tpu.memory_space<vmem>>, vector<4x256xf32>
    %c0_21 = arith.constant 0 : index
    %c111_22 = arith.constant 111 : index
    %52 = vector.load %arg5[%c0_21, %c111_22] : memref<4x512xf32, #tpu.memory_space<vmem>>, vector<4x256xf32>
    %c0_23 = arith.constant 0 : index
    %c113_24 = arith.constant 113 : index
    %53 = vector.load %arg5[%c0_23, %c113_24] : memref<4x512xf32, #tpu.memory_space<vmem>>, vector<4x256xf32>
    %54 = arith.select %43, %52, %53 : vector<4x256xi1>, vector<4x256xf32>
    %c0_25 = arith.constant 0 : index
    %c129 = arith.constant 129 : index
    %55 = vector.load %arg5[%c0_25, %c129] : memref<4x512xf32, #tpu.memory_space<vmem>>, vector<4x256xf32>
    %c0_26 = arith.constant 0 : index
    %c127 = arith.constant 127 : index
    %56 = vector.load %arg5[%c0_26, %c127] : memref<4x512xf32, #tpu.memory_space<vmem>>, vector<4x256xf32>
    %57 = arith.select %25, %55, %56 : vector<4x256xi1>, vector<4x256xf32>
    %c0_27 = arith.constant 0 : index
    %c127_28 = arith.constant 127 : index
    %58 = vector.load %arg5[%c0_27, %c127_28] : memref<4x512xf32, #tpu.memory_space<vmem>>, vector<4x256xf32>
    %c0_29 = arith.constant 0 : index
    %c129_30 = arith.constant 129 : index
    %59 = vector.load %arg5[%c0_29, %c129_30] : memref<4x512xf32, #tpu.memory_space<vmem>>, vector<4x256xf32>
    %60 = arith.select %43, %58, %59 : vector<4x256xi1>, vector<4x256xf32>
    %c0_31 = arith.constant 0 : index
    %c145 = arith.constant 145 : index
    %61 = vector.load %arg5[%c0_31, %c145] : memref<4x512xf32, #tpu.memory_space<vmem>>, vector<4x256xf32>
    %c0_32 = arith.constant 0 : index
    %c143 = arith.constant 143 : index
    %62 = vector.load %arg5[%c0_32, %c143] : memref<4x512xf32, #tpu.memory_space<vmem>>, vector<4x256xf32>
    %63 = arith.select %25, %61, %62 : vector<4x256xi1>, vector<4x256xf32>
    %c0_33 = arith.constant 0 : index
    %c144 = arith.constant 144 : index
    %64 = vector.load %arg5[%c0_33, %c144] : memref<4x512xf32, #tpu.memory_space<vmem>>, vector<4x256xf32>
    %c0_34 = arith.constant 0 : index
    %c143_35 = arith.constant 143 : index
    %65 = vector.load %arg5[%c0_34, %c143_35] : memref<4x512xf32, #tpu.memory_space<vmem>>, vector<4x256xf32>
    %c0_36 = arith.constant 0 : index
    %c145_37 = arith.constant 145 : index
    %66 = vector.load %arg5[%c0_36, %c145_37] : memref<4x512xf32, #tpu.memory_space<vmem>>, vector<4x256xf32>
    %67 = arith.select %43, %65, %66 : vector<4x256xi1>, vector<4x256xf32>
    %cst_38 = arith.constant 0.000000e+00 : f32
    %68 = vector.broadcast %cst_38 : f32 to vector<4x256xf32>
    %69 = arith.select %45, %63, %50 : vector<4x256xi1>, vector<4x256xf32>
    %c0_39 = arith.constant 0 : index
    %c0_40 = arith.constant 0 : index
    %70 = vector.load %arg2[%c0_39, %c0_40] : memref<4x36xf32, #tpu.memory_space<vmem>>, vector<4x4xf32>
    %cst_41 = arith.constant dense<0.000000e+00> : vector<4x256xf32>
    %71 = tpu.matmul %70, %69, %cst_41 {dimension_numbers = #tpu.dot_dimension_numbers<[1], [0], [0], [1], [0, 0, 1, 1], [], []>} : vector<4x4xf32>, vector<4x256xf32>, vector<4x256xf32> -> vector<4x256xf32>
    %72 = arith.addf %68, %71 : vector<4x256xf32>
    %73 = arith.select %45, %64, %51 : vector<4x256xi1>, vector<4x256xf32>
    %c0_42 = arith.constant 0 : index
    %c4 = arith.constant 4 : index
    %74 = vector.load %arg2[%c0_42, %c4] : memref<4x36xf32, #tpu.memory_space<vmem>>, vector<4x4xf32>
    %cst_43 = arith.constant dense<0.000000e+00> : vector<4x256xf32>
    %75 = tpu.matmul %74, %73, %cst_43 {dimension_numbers = #tpu.dot_dimension_numbers<[1], [0], [0], [1], [0, 0, 1, 1], [], []>} : vector<4x4xf32>, vector<4x256xf32>, vector<4x256xf32> -> vector<4x256xf32>
    %76 = arith.addf %72, %75 : vector<4x256xf32>
    %77 = arith.select %45, %67, %54 : vector<4x256xi1>, vector<4x256xf32>
    %c0_44 = arith.constant 0 : index
    %c8 = arith.constant 8 : index
    %78 = vector.load %arg2[%c0_44, %c8] : memref<4x36xf32, #tpu.memory_space<vmem>>, vector<4x4xf32>
    %cst_45 = arith.constant dense<0.000000e+00> : vector<4x256xf32>
    %79 = tpu.matmul %78, %77, %cst_45 {dimension_numbers = #tpu.dot_dimension_numbers<[1], [0], [0], [1], [0, 0, 1, 1], [], []>} : vector<4x4xf32>, vector<4x256xf32>, vector<4x256xf32> -> vector<4x256xf32>
    %80 = arith.addf %76, %79 : vector<4x256xf32>
    %c0_46 = arith.constant 0 : index
    %c12 = arith.constant 12 : index
    %81 = vector.load %arg2[%c0_46, %c12] : memref<4x36xf32, #tpu.memory_space<vmem>>, vector<4x4xf32>
    %cst_47 = arith.constant dense<0.000000e+00> : vector<4x256xf32>
    %82 = tpu.matmul %81, %57, %cst_47 {dimension_numbers = #tpu.dot_dimension_numbers<[1], [0], [0], [1], [0, 0, 1, 1], [], []>} : vector<4x4xf32>, vector<4x256xf32>, vector<4x256xf32> -> vector<4x256xf32>
    %83 = arith.addf %80, %82 : vector<4x256xf32>
    %c0_48 = arith.constant 0 : index
    %c16 = arith.constant 16 : index
    %84 = vector.load %arg2[%c0_48, %c16] : memref<4x36xf32, #tpu.memory_space<vmem>>, vector<4x4xf32>
    %cst_49 = arith.constant dense<0.000000e+00> : vector<4x256xf32>
    %85 = tpu.matmul %84, %5, %cst_49 {dimension_numbers = #tpu.dot_dimension_numbers<[1], [0], [0], [1], [0, 0, 1, 1], [], []>} : vector<4x4xf32>, vector<4x256xf32>, vector<4x256xf32> -> vector<4x256xf32>
    %86 = arith.addf %83, %85 : vector<4x256xf32>
    %c0_50 = arith.constant 0 : index
    %c20 = arith.constant 20 : index
    %87 = vector.load %arg2[%c0_50, %c20] : memref<4x36xf32, #tpu.memory_space<vmem>>, vector<4x4xf32>
    %cst_51 = arith.constant dense<0.000000e+00> : vector<4x256xf32>
    %88 = tpu.matmul %87, %60, %cst_51 {dimension_numbers = #tpu.dot_dimension_numbers<[1], [0], [0], [1], [0, 0, 1, 1], [], []>} : vector<4x4xf32>, vector<4x256xf32>, vector<4x256xf32> -> vector<4x256xf32>
    %89 = arith.addf %86, %88 : vector<4x256xf32>
    %90 = arith.select %47, %50, %63 : vector<4x256xi1>, vector<4x256xf32>
    %c0_52 = arith.constant 0 : index
    %c24 = arith.constant 24 : index
    %91 = vector.load %arg2[%c0_52, %c24] : memref<4x36xf32, #tpu.memory_space<vmem>>, vector<4x4xf32>
    %cst_53 = arith.constant dense<0.000000e+00> : vector<4x256xf32>
    %92 = tpu.matmul %91, %90, %cst_53 {dimension_numbers = #tpu.dot_dimension_numbers<[1], [0], [0], [1], [0, 0, 1, 1], [], []>} : vector<4x4xf32>, vector<4x256xf32>, vector<4x256xf32> -> vector<4x256xf32>
    %93 = arith.addf %89, %92 : vector<4x256xf32>
    %94 = arith.select %47, %51, %64 : vector<4x256xi1>, vector<4x256xf32>
    %c0_54 = arith.constant 0 : index
    %c28 = arith.constant 28 : index
    %95 = vector.load %arg2[%c0_54, %c28] : memref<4x36xf32, #tpu.memory_space<vmem>>, vector<4x4xf32>
    %cst_55 = arith.constant dense<0.000000e+00> : vector<4x256xf32>
    %96 = tpu.matmul %95, %94, %cst_55 {dimension_numbers = #tpu.dot_dimension_numbers<[1], [0], [0], [1], [0, 0, 1, 1], [], []>} : vector<4x4xf32>, vector<4x256xf32>, vector<4x256xf32> -> vector<4x256xf32>
    %97 = arith.addf %93, %96 : vector<4x256xf32>
    %98 = arith.select %47, %54, %67 : vector<4x256xi1>, vector<4x256xf32>
    %c0_56 = arith.constant 0 : index
    %c32 = arith.constant 32 : index
    %99 = vector.load %arg2[%c0_56, %c32] : memref<4x36xf32, #tpu.memory_space<vmem>>, vector<4x4xf32>
    %cst_57 = arith.constant dense<0.000000e+00> : vector<4x256xf32>
    %100 = tpu.matmul %99, %98, %cst_57 {dimension_numbers = #tpu.dot_dimension_numbers<[1], [0], [0], [1], [0, 0, 1, 1], [], []>} : vector<4x4xf32>, vector<4x256xf32>, vector<4x256xf32> -> vector<4x256xf32>
    %101 = arith.addf %97, %100 : vector<4x256xf32>
    %cst_58 = arith.constant dense<0.000000e+00> : vector<4xf32>
    %102 = vector.multi_reduction <add>, %101, %cst_58 [1] : vector<4x256xf32> to vector<4xf32>
    %103 = vector.shape_cast %102 : vector<4xf32> to vector<4x1xf32>
    %cst_59 = arith.constant 3.906250e-03 : f32
    %104 = vector.broadcast %cst_59 : f32 to vector<4x1xf32>
    %105 = arith.mulf %103, %104 : vector<4x1xf32>
    %106 = arith.mulf %101, %101 : vector<4x256xf32>
    %cst_60 = arith.constant dense<0.000000e+00> : vector<4xf32>
    %107 = vector.multi_reduction <add>, %106, %cst_60 [1] : vector<4x256xf32> to vector<4xf32>
    %108 = vector.shape_cast %107 : vector<4xf32> to vector<4x1xf32>
    %cst_61 = arith.constant 3.906250e-03 : f32
    %109 = vector.broadcast %cst_61 : f32 to vector<4x1xf32>
    %110 = arith.mulf %108, %109 : vector<4x1xf32>
    %111 = arith.mulf %105, %105 : vector<4x1xf32>
    %112 = arith.subf %110, %111 : vector<4x1xf32>
    %cst_62 = arith.constant 0.000000e+00 : f32
    %113 = vector.broadcast %cst_62 : f32 to vector<4x1xf32>
    %114 = arith.maximumf %112, %113 : vector<4x1xf32>
    %115 = vector.broadcast %105 : vector<4x1xf32> to vector<4x256xf32>
    %116 = arith.subf %101, %115 : vector<4x256xf32>
    %cst_63 = arith.constant 9.99999974E-6 : f32
    %117 = vector.broadcast %cst_63 : f32 to vector<4x1xf32>
    %118 = arith.addf %114, %117 : vector<4x1xf32>
    %119 = math.rsqrt %118 : vector<4x1xf32>
    %120 = vector.broadcast %119 : vector<4x1xf32> to vector<4x256xf32>
    %121 = arith.mulf %116, %120 : vector<4x256xf32>
    %cst_64 = arith.constant 0.000000e+00 : f32
    %122 = vector.broadcast %cst_64 : f32 to vector<4x256xf32>
    %123 = arith.maximumf %121, %122 : vector<4x256xf32>
    %c0_65 = arith.constant 0 : index
    %c128_66 = arith.constant 128 : index
    %124 = vector.load %arg5[%c0_65, %c128_66] : memref<4x512xf32, #tpu.memory_space<vmem>>, vector<4x256xf32>
    tpu.vector_store %arg5[%c0_65, %c128_66], %123 {strides = array<i32>} : memref<4x512xf32, #tpu.memory_space<vmem>>, vector<4x256xf32>,
    %125 = tpu.iota {dimensions = array<i32: 1>} : vector<4x256xi32>
    %c16_i32_67 = arith.constant 16 : i32
    %c0_i32_68 = arith.constant 0 : i32
    %126 = arith.cmpi eq, %c16_i32_67, %c0_i32_68 : i32
    %c1_i32_69 = arith.constant 1 : i32
    %127 = arith.select %126, %c1_i32_69, %c16_i32_67 : i32
    %128 = vector.broadcast %127 : i32 to vector<4x256xi32>
    %129 = arith.remsi %125, %128 : vector<4x256xi32>
    %c0_i32_70 = arith.constant 0 : i32
    %130 = vector.broadcast %c0_i32_70 : i32 to vector<4x256xi32>
    %131 = arith.cmpi ne, %129, %130 : vector<4x256xi32>
    %c0_i32_71 = arith.constant 0 : i32
    %132 = vector.broadcast %c0_i32_71 : i32 to vector<4x256xi32>
    %133 = arith.cmpi slt, %129, %132 : vector<4x256xi32>
    %c0_i32_72 = arith.constant 0 : i32
    %134 = arith.cmpi slt, %127, %c0_i32_72 : i32
    %135 = vector.broadcast %134 : i1 to vector<4x256xi1>
    %136 = vector.broadcast %135 : vector<4x256xi1> to vector<4x256xi1>
    %137 = arith.xori %133, %136 : vector<4x256xi1>
    %138 = arith.andi %137, %131 : vector<4x256xi1>
    %139 = vector.broadcast %127 : i32 to vector<4x256xi32>
    %140 = arith.addi %129, %139 : vector<4x256xi32>
    %141 = arith.select %138, %140, %129 : vector<4x256xi1>, vector<4x256xi32>
    %c0_i32_73 = arith.constant 0 : i32
    %142 = vector.broadcast %c0_i32_73 : i32 to vector<4x256xi32>
    %143 = arith.cmpi eq, %141, %142 : vector<4x256xi32>
    %c16_i32_74 = arith.constant 16 : i32
    %c0_i32_75 = arith.constant 0 : i32
    %144 = arith.cmpi eq, %c16_i32_74, %c0_i32_75 : i32
    %c1_i32_76 = arith.constant 1 : i32
    %145 = arith.select %144, %c1_i32_76, %c16_i32_74 : i32
    %146 = vector.broadcast %145 : i32 to vector<4x256xi32>
    %147 = arith.remsi %125, %146 : vector<4x256xi32>
    %c0_i32_77 = arith.constant 0 : i32
    %148 = vector.broadcast %c0_i32_77 : i32 to vector<4x256xi32>
    %149 = arith.cmpi ne, %147, %148 : vector<4x256xi32>
    %c0_i32_78 = arith.constant 0 : i32
    %150 = vector.broadcast %c0_i32_78 : i32 to vector<4x256xi32>
    %151 = arith.cmpi slt, %147, %150 : vector<4x256xi32>
    %c0_i32_79 = arith.constant 0 : i32
    %152 = arith.cmpi slt, %145, %c0_i32_79 : i32
    %153 = vector.broadcast %152 : i1 to vector<4x256xi1>
    %154 = vector.broadcast %153 : vector<4x256xi1> to vector<4x256xi1>
    %155 = arith.xori %151, %154 : vector<4x256xi1>
    %156 = arith.andi %155, %149 : vector<4x256xi1>
    %157 = vector.broadcast %145 : i32 to vector<4x256xi32>
    %158 = arith.addi %147, %157 : vector<4x256xi32>
    %159 = arith.select %156, %158, %147 : vector<4x256xi1>, vector<4x256xi32>
    %c15_i32_80 = arith.constant 15 : i32
    %160 = vector.broadcast %c15_i32_80 : i32 to vector<4x256xi32>
    %161 = arith.cmpi eq, %159, %160 : vector<4x256xi32>
    %c16_i32_81 = arith.constant 16 : i32
    %162 = vector.broadcast %c16_i32_81 : i32 to vector<4x256xi32>
    %163 = arith.cmpi slt, %125, %162 : vector<4x256xi32>
    %c240_i32_82 = arith.constant 240 : i32
    %164 = vector.broadcast %c240_i32_82 : i32 to vector<4x256xi32>
    %165 = arith.cmpi sge, %125, %164 : vector<4x256xi32>
    %c0_83 = arith.constant 0 : index
    %c113_84 = arith.constant 113 : index
    %166 = vector.load %arg5[%c0_83, %c113_84] : memref<4x512xf32, #tpu.memory_space<vmem>>, vector<4x256xf32>
    %c0_85 = arith.constant 0 : index
    %c111_86 = arith.constant 111 : index
    %167 = vector.load %arg5[%c0_85, %c111_86] : memref<4x512xf32, #tpu.memory_space<vmem>>, vector<4x256xf32>
    %168 = arith.select %143, %166, %167 : vector<4x256xi1>, vector<4x256xf32>
    %c0_87 = arith.constant 0 : index
    %c112_88 = arith.constant 112 : index
    %169 = vector.load %arg5[%c0_87, %c112_88] : memref<4x512xf32, #tpu.memory_space<vmem>>, vector<4x256xf32>
    %c0_89 = arith.constant 0 : index
    %c111_90 = arith.constant 111 : index
    %170 = vector.load %arg5[%c0_89, %c111_90] : memref<4x512xf32, #tpu.memory_space<vmem>>, vector<4x256xf32>
    %c0_91 = arith.constant 0 : index
    %c113_92 = arith.constant 113 : index
    %171 = vector.load %arg5[%c0_91, %c113_92] : memref<4x512xf32, #tpu.memory_space<vmem>>, vector<4x256xf32>
    %172 = arith.select %161, %170, %171 : vector<4x256xi1>, vector<4x256xf32>
    %c0_93 = arith.constant 0 : index
    %c129_94 = arith.constant 129 : index
    %173 = vector.load %arg5[%c0_93, %c129_94] : memref<4x512xf32, #tpu.memory_space<vmem>>, vector<4x256xf32>
    %c0_95 = arith.constant 0 : index
    %c127_96 = arith.constant 127 : index
    %174 = vector.load %arg5[%c0_95, %c127_96] : memref<4x512xf32, #tpu.memory_space<vmem>>, vector<4x256xf32>
    %175 = arith.select %143, %173, %174 : vector<4x256xi1>, vector<4x256xf32>
    %c0_97 = arith.constant 0 : index
    %c127_98 = arith.constant 127 : index
    %176 = vector.load %arg5[%c0_97, %c127_98] : memref<4x512xf32, #tpu.memory_space<vmem>>, vector<4x256xf32>
    %c0_99 = arith.constant 0 : index
    %c129_100 = arith.constant 129 : index
    %177 = vector.load %arg5[%c0_99, %c129_100] : memref<4x512xf32, #tpu.memory_space<vmem>>, vector<4x256xf32>
    %178 = arith.select %161, %176, %177 : vector<4x256xi1>, vector<4x256xf32>
    %c0_101 = arith.constant 0 : index
    %c145_102 = arith.constant 145 : index
    %179 = vector.load %arg5[%c0_101, %c145_102] : memref<4x512xf32, #tpu.memory_space<vmem>>, vector<4x256xf32>
    %c0_103 = arith.constant 0 : index
    %c143_104 = arith.constant 143 : index
    %180 = vector.load %arg5[%c0_103, %c143_104] : memref<4x512xf32, #tpu.memory_space<vmem>>, vector<4x256xf32>
    %181 = arith.select %143, %179, %180 : vector<4x256xi1>, vector<4x256xf32>
    %c0_105 = arith.constant 0 : index
    %c144_106 = arith.constant 144 : index
    %182 = vector.load %arg5[%c0_105, %c144_106] : memref<4x512xf32, #tpu.memory_space<vmem>>, vector<4x256xf32>
    %c0_107 = arith.constant 0 : index
    %c143_108 = arith.constant 143 : index
    %183 = vector.load %arg5[%c0_107, %c143_108] : memref<4x512xf32, #tpu.memory_space<vmem>>, vector<4x256xf32>
    %c0_109 = arith.constant 0 : index
    %c145_110 = arith.constant 145 : index
    %184 = vector.load %arg5[%c0_109, %c145_110] : memref<4x512xf32, #tpu.memory_space<vmem>>, vector<4x256xf32>
    %185 = arith.select %161, %183, %184 : vector<4x256xi1>, vector<4x256xf32>
    %cst_111 = arith.constant 0.000000e+00 : f32
    %186 = vector.broadcast %cst_111 : f32 to vector<4x256xf32>
    %187 = arith.select %163, %181, %168 : vector<4x256xi1>, vector<4x256xf32>
    %c0_112 = arith.constant 0 : index
    %c0_113 = arith.constant 0 : index
    %188 = vector.load %arg3[%c0_112, %c0_113] : memref<4x36xf32, #tpu.memory_space<vmem>>, vector<4x4xf32>
    %cst_114 = arith.constant dense<0.000000e+00> : vector<4x256xf32>
    %189 = tpu.matmul %188, %187, %cst_114 {dimension_numbers = #tpu.dot_dimension_numbers<[1], [0], [0], [1], [0, 0, 1, 1], [], []>} : vector<4x4xf32>, vector<4x256xf32>, vector<4x256xf32> -> vector<4x256xf32>
    %190 = arith.addf %186, %189 : vector<4x256xf32>
    %191 = arith.select %163, %182, %169 : vector<4x256xi1>, vector<4x256xf32>
    %c0_115 = arith.constant 0 : index
    %c4_116 = arith.constant 4 : index
    %192 = vector.load %arg3[%c0_115, %c4_116] : memref<4x36xf32, #tpu.memory_space<vmem>>, vector<4x4xf32>
    %cst_117 = arith.constant dense<0.000000e+00> : vector<4x256xf32>
    %193 = tpu.matmul %192, %191, %cst_117 {dimension_numbers = #tpu.dot_dimension_numbers<[1], [0], [0], [1], [0, 0, 1, 1], [], []>} : vector<4x4xf32>, vector<4x256xf32>, vector<4x256xf32> -> vector<4x256xf32>
    %194 = arith.addf %190, %193 : vector<4x256xf32>
    %195 = arith.select %163, %185, %172 : vector<4x256xi1>, vector<4x256xf32>
    %c0_118 = arith.constant 0 : index
    %c8_119 = arith.constant 8 : index
    %196 = vector.load %arg3[%c0_118, %c8_119] : memref<4x36xf32, #tpu.memory_space<vmem>>, vector<4x4xf32>
    %cst_120 = arith.constant dense<0.000000e+00> : vector<4x256xf32>
    %197 = tpu.matmul %196, %195, %cst_120 {dimension_numbers = #tpu.dot_dimension_numbers<[1], [0], [0], [1], [0, 0, 1, 1], [], []>} : vector<4x4xf32>, vector<4x256xf32>, vector<4x256xf32> -> vector<4x256xf32>
    %198 = arith.addf %194, %197 : vector<4x256xf32>
    %c0_121 = arith.constant 0 : index
    %c12_122 = arith.constant 12 : index
    %199 = vector.load %arg3[%c0_121, %c12_122] : memref<4x36xf32, #tpu.memory_space<vmem>>, vector<4x4xf32>
    %cst_123 = arith.constant dense<0.000000e+00> : vector<4x256xf32>
    %200 = tpu.matmul %199, %175, %cst_123 {dimension_numbers = #tpu.dot_dimension_numbers<[1], [0], [0], [1], [0, 0, 1, 1], [], []>} : vector<4x4xf32>, vector<4x256xf32>, vector<4x256xf32> -> vector<4x256xf32>
    %201 = arith.addf %198, %200 : vector<4x256xf32>
    %c0_124 = arith.constant 0 : index
    %c16_125 = arith.constant 16 : index
    %202 = vector.load %arg3[%c0_124, %c16_125] : memref<4x36xf32, #tpu.memory_space<vmem>>, vector<4x4xf32>
    %cst_126 = arith.constant dense<0.000000e+00> : vector<4x256xf32>
    %203 = tpu.matmul %202, %123, %cst_126 {dimension_numbers = #tpu.dot_dimension_numbers<[1], [0], [0], [1], [0, 0, 1, 1], [], []>} : vector<4x4xf32>, vector<4x256xf32>, vector<4x256xf32> -> vector<4x256xf32>
    %204 = arith.addf %201, %203 : vector<4x256xf32>
    %c0_127 = arith.constant 0 : index
    %c20_128 = arith.constant 20 : index
    %205 = vector.load %arg3[%c0_127, %c20_128] : memref<4x36xf32, #tpu.memory_space<vmem>>, vector<4x4xf32>
    %cst_129 = arith.constant dense<0.000000e+00> : vector<4x256xf32>
    %206 = tpu.matmul %205, %178, %cst_129 {dimension_numbers = #tpu.dot_dimension_numbers<[1], [0], [0], [1], [0, 0, 1, 1], [], []>} : vector<4x4xf32>, vector<4x256xf32>, vector<4x256xf32> -> vector<4x256xf32>
    %207 = arith.addf %204, %206 : vector<4x256xf32>
    %208 = arith.select %165, %168, %181 : vector<4x256xi1>, vector<4x256xf32>
    %c0_130 = arith.constant 0 : index
    %c24_131 = arith.constant 24 : index
    %209 = vector.load %arg3[%c0_130, %c24_131] : memref<4x36xf32, #tpu.memory_space<vmem>>, vector<4x4xf32>
    %cst_132 = arith.constant dense<0.000000e+00> : vector<4x256xf32>
    %210 = tpu.matmul %209, %208, %cst_132 {dimension_numbers = #tpu.dot_dimension_numbers<[1], [0], [0], [1], [0, 0, 1, 1], [], []>} : vector<4x4xf32>, vector<4x256xf32>, vector<4x256xf32> -> vector<4x256xf32>
    %211 = arith.addf %207, %210 : vector<4x256xf32>
    %212 = arith.select %165, %169, %182 : vector<4x256xi1>, vector<4x256xf32>
    %c0_133 = arith.constant 0 : index
    %c28_134 = arith.constant 28 : index
    %213 = vector.load %arg3[%c0_133, %c28_134] : memref<4x36xf32, #tpu.memory_space<vmem>>, vector<4x4xf32>
    %cst_135 = arith.constant dense<0.000000e+00> : vector<4x256xf32>
    %214 = tpu.matmul %213, %212, %cst_135 {dimension_numbers = #tpu.dot_dimension_numbers<[1], [0], [0], [1], [0, 0, 1, 1], [], []>} : vector<4x4xf32>, vector<4x256xf32>, vector<4x256xf32> -> vector<4x256xf32>
    %215 = arith.addf %211, %214 : vector<4x256xf32>
    %216 = arith.select %165, %172, %185 : vector<4x256xi1>, vector<4x256xf32>
    %c0_136 = arith.constant 0 : index
    %c32_137 = arith.constant 32 : index
    %217 = vector.load %arg3[%c0_136, %c32_137] : memref<4x36xf32, #tpu.memory_space<vmem>>, vector<4x4xf32>
    %cst_138 = arith.constant dense<0.000000e+00> : vector<4x256xf32>
    %218 = tpu.matmul %217, %216, %cst_138 {dimension_numbers = #tpu.dot_dimension_numbers<[1], [0], [0], [1], [0, 0, 1, 1], [], []>} : vector<4x4xf32>, vector<4x256xf32>, vector<4x256xf32> -> vector<4x256xf32>
    %219 = arith.addf %215, %218 : vector<4x256xf32>
    %cst_139 = arith.constant dense<0.000000e+00> : vector<4xf32>
    %220 = vector.multi_reduction <add>, %219, %cst_139 [1] : vector<4x256xf32> to vector<4xf32>
    %221 = vector.shape_cast %220 : vector<4xf32> to vector<4x1xf32>
    %cst_140 = arith.constant 3.906250e-03 : f32
    %222 = vector.broadcast %cst_140 : f32 to vector<4x1xf32>
    %223 = arith.mulf %221, %222 : vector<4x1xf32>
    %224 = arith.mulf %219, %219 : vector<4x256xf32>
    %cst_141 = arith.constant dense<0.000000e+00> : vector<4xf32>
    %225 = vector.multi_reduction <add>, %224, %cst_141 [1] : vector<4x256xf32> to vector<4xf32>
    %226 = vector.shape_cast %225 : vector<4xf32> to vector<4x1xf32>
    %cst_142 = arith.constant 3.906250e-03 : f32
    %227 = vector.broadcast %cst_142 : f32 to vector<4x1xf32>
    %228 = arith.mulf %226, %227 : vector<4x1xf32>
    %229 = arith.mulf %223, %223 : vector<4x1xf32>
    %230 = arith.subf %228, %229 : vector<4x1xf32>
    %cst_143 = arith.constant 0.000000e+00 : f32
    %231 = vector.broadcast %cst_143 : f32 to vector<4x1xf32>
    %232 = arith.maximumf %230, %231 : vector<4x1xf32>
    %233 = vector.broadcast %223 : vector<4x1xf32> to vector<4x256xf32>
    %234 = arith.subf %219, %233 : vector<4x256xf32>
    %cst_144 = arith.constant 9.99999974E-6 : f32
    %235 = vector.broadcast %cst_144 : f32 to vector<4x1xf32>
    %236 = arith.addf %232, %235 : vector<4x1xf32>
    %237 = math.rsqrt %236 : vector<4x1xf32>
    %238 = vector.broadcast %237 : vector<4x1xf32> to vector<4x256xf32>
    %239 = arith.mulf %234, %238 : vector<4x256xf32>
    %c0_145 = arith.constant 0 : index
    %c0_146 = arith.constant 0 : index
    %c0_147 = arith.constant 0 : index
    %240 = vector.load %arg1[%c0_145, %c0_146, %c0_147] : memref<1x4x256xf32, #tpu.memory_space<vmem>>, vector<1x4x256xf32>
    %241 = vector.shape_cast %240 : vector<1x4x256xf32> to vector<4x256xf32>
    %242 = arith.addf %241, %239 : vector<4x256xf32>
    %c0_148 = arith.constant 0 : index
    %c0_149 = arith.constant 0 : index
    %c0_150 = arith.constant 0 : index
    %243 = vector.load %arg4[%c0_148, %c0_149, %c0_150] : memref<1x4x256xf32, #tpu.memory_space<vmem>>, vector<1x4x256xf32>
    %244 = vector.shape_cast %243 : vector<1x4x256xf32> to vector<4x256xf32>
    %245 = vector.shape_cast %242 : vector<4x256xf32> to vector<1x4x256xf32>
    tpu.vector_store %arg4[%c0_148, %c0_149, %c0_150], %245 {strides = array<i32>} : memref<1x4x256xf32, #tpu.memory_space<vmem>>, vector<1x4x256xf32>,
    return
  }
  func.func @transform_0(%arg0: i32) -> (i32, i32, i32) {
    %c0_i32 = arith.constant 0 : i32
    %c0_i32_0 = arith.constant 0 : i32
    %c0_i32_1 = arith.constant 0 : i32
    return %arg0, %c0_i32, %c0_i32_0 : i32, i32, i32
  }
  func.func @transform_1(%arg0: i32) -> (i32, i32) {
    %c0_i32 = arith.constant 0 : i32
    %c0_i32_0 = arith.constant 0 : i32
    %c0_i32_1 = arith.constant 0 : i32
    return %c0_i32, %c0_i32_0 : i32, i32
  }
  func.func @transform_2(%arg0: i32) -> (i32, i32) {
    %c0_i32 = arith.constant 0 : i32
    %c0_i32_0 = arith.constant 0 : i32
    %c0_i32_1 = arith.constant 0 : i32
    return %c0_i32, %c0_i32_0 : i32, i32
  }
  func.func @transform_3(%arg0: i32) -> (i32, i32, i32) {
    %c0_i32 = arith.constant 0 : i32
    %c0_i32_0 = arith.constant 0 : i32
    %c0_i32_1 = arith.constant 0 : i32
    return %arg0, %c0_i32, %c0_i32_0 : i32, i32, i32
  }
}

</mosaic_0001>

<bundles_post_ra>
// kernel: tpu_custom_call.1
= control target key start
LH: loop header
LB: loop body
LE: loop exit
PB: predicated region body
PF: predicated region fallthrough
CT: control target
= control target key end

     0   :  { %8 = vsyncpa [#allocation4], 0  ;;  %s3045_s0 = inlined_call_operand.hbm [shape: f32[2,4,256], index: 0, kind: input, shape index: {}]   ;;  %s3046_s1 = inlined_call_operand.hbm [shape: f32[4,36], index: 1, kind: input, shape index: {}]   ;;  %s3047_s2 = inlined_call_operand.vmem [shape: f32[4,36], index: 2, kind: input, shape index: {}]   ;;  %s3048_s3 = inlined_call_operand.hbm [shape: f32[2,4,256], index: 3, kind: output, shape index: {}]  }
   0x1   :  { %10 = vsyncpa [#allocation4 + $0x1], 0 }
   0x2   :  { %11 = vsyncpa [#allocation7], 0 }
   0x3   :  { %12 = vsyncpa [#allocation5], 0 }
   0x4   :  { %14 = vsyncpa [#allocation5 + $0x1], 0  ;;  %s2476_s12 = smov 0   ;;  %s2478_s13 = smov 0  }
   0x5   :  { %s2480_s14 = smov 0   ;;  %s2482_s15 = smov 0  }
   0x6 LB: > { %s2497_s16 = sadd.s32 4294967295, %s2435_s15   ;;  %s2122_s17 = sadd.s32 4294967294, %s2435_s15   ;;  %s2435_s15 = sphi %s2482_s15, %s3082_s15   ;;  %s2431_s14 = sphi %s2480_s14, %s3081_s14   ;;  %s2427_s13 = sphi %s2478_s13, %s3080_s13   ;;  %s2423_s12 = sphi %s2476_s12, %s3079_s12  }
   0x7   : > { %p40_p0 = scmp.ne.s32.totalorder %s2427_s13, %s2423_s12  ;;  %p3049_p1 = scmp.eq.s32.totalorder %s2497_s16, 0 }
   0x8   : > { %p112_p3 = scmp.eq.s32.totalorder %s2122_s17, 1  ;;  %p2123_p5 = scmp.ge.s32.totalorder %s2435_s15, 1 }
   0x9   : > { %p2506_p4 = por %p3049_p1, %p40_p0  ;;  %p119_p7 = scmp.lt.s32.totalorder %s2435_s15, 3 }
   0xa   : > { %p2511_p6 = por %p112_p3, %p40_p0  ;;  %s2437_s21 = smov [#allocation6]  }
   0xb   : > { %s3053_s18 = scalar_select %p2506_p4, 1, 0 }
   0xc   : > { %s3054_s19 = scalar_select %p2511_p6, 1, 0 }
   0xd   : > { %p2516_p8 = pnand %p2123_p5, %p119_p7  ;;  %s132_s22 = sshll.u32 %s2437_s21, 4  ;;  %s133_s22 = int_to_ptr.vmem [resolvable:$true] %s132_s22 }
   0xe   : > { %s2524_s23 = sadd.s32 1, %s2435_s15   ;;  %s27_s27 = sadd.s32 1, %s2431_s14 }
   0xf   : > { %s3055_s20 = scalar_select %p2516_p8, 1, 0 }
  0x10   : > { %p2234_p10 = pneg %p2516_p8  ;;  %s24_s25 = ssub.s32 %s2435_s15, %s2524_s23 }
  0x11   : > { %p2534_p12 = scmp.eq.s32.totalorder %s24_s25, 0  ;;  %s2307_s30 = scalar_lea.hbm %s3046_s1, 64 }
  0x12   : > { %p2528_p11 = pnand %p2234_p10, %p3049_p1  ;;  %p2308_p0 = scmp.ne.s32.totalorder %s3046_s1, %s2307_s30 }
  0x13   : > { %s3057_s26 = scalar_select %p2534_p12, 1, 0 }
  0x14   : > { %p2309_p3 = pneg %p2528_p11  ;;  %p2314_p10 = scmp.lt.u32.totalorder %s2307_s30, %s3046_s1 }
  0x16   : > { %p2310_p5 = pnand %p2309_p3, %p2308_p0 }
  0x18   : > { %p2311_p7 = pneg %p2310_p5 }
  0x1a   : > { %p2316_p9 = pnand %p2314_p10, %p2311_p7 }
  0x1c   : > { %2319 = shalt.err (!%p2316_p9)
}
  0x1d   : > { %s2320_s8 = scalar_lea.vmem %s133_s22, 64  ;;  %p2328_p6 = scmp.lt.s32.totalorder %s133_s22, %s133_s22 }
  0x1e   : > { %p2321_p1 = scmp.ne.s32.totalorder %s133_s22, %s2320_s8  ;;  %p2329_p4 = scmp.lt.s32.totalorder %s2320_s8, %s2320_s8 }
  0x20   : > { %p2323_p2 = pnand %p2321_p1, %p2309_p3  ;;  %p2330_p8 = por %p2329_p4, %p2328_p6 }
  0x22   : > { %p2324_p13 = pneg %p2323_p2 }
  0x24   : > { %p2331_p12 = pnand %p2330_p8, %p2324_p13 }
  0x26   : > { %2334 = shalt.err (!%p2331_p12)
}
  0x27   : > { %2237 = dma.hbm_to_vmem [thread:$0]  (!%p2528_p11), %s3046_s1, 64, %s133_s22, [#allocation7]  }
  0x28   : > { %p3058_p1 = scmp.ne.s32.totalorder %s3057_s26, 0  ;;  %p35_p2 = scmp.eq.s32.totalorder %s2435_s15, 0 }
  0x29   : > { %p3059_p4 = scmp.ne.s32.totalorder %s2431_s14, %s2427_s13  ;;  %p3060_p6 = scmp.eq.s32.totalorder %s2497_s16, 1 }
  0x2a   : > { %s2560_s11 = scalar_select %p3058_p1, %s2431_s14, %s27_s27  }
  0x2b   : > { %p2568_p8 = por %p3060_p6, %p3059_p4  ;;  %p2247_p9 = scmp.lt.s32.totalorder %s2435_s15, 2 }
  0x2c   : > { %s146_s21 = sand.u32 1, %s2431_s14   ;;  %p3062_p12 = pmov %p3059_p4 }
  0x2d   : > { %s2126_s24 = sshll.u32 %s146_s21, 3  ;;  %s2192_s25 = sshll.u32 %s2435_s15, 7 }
  0x2e   : > { %p36_p13 = por %p35_p2, %p3062_p12  ;;  %s2581_s22 = scalar_lea.hbm %s3045_s0, %s2192_s25 }
  0x2f   : > { %s150_s26 = scalar_lea.vmem [#allocation3], %s2126_s24  ;;  %s147_s4 = scalar_lea.sflag [#allocation4], %s146_s21 }
  0x30   : > { %s158_s27 = sshll.u32 %s150_s26, 4  ;;  %p2583_p11 = pnand %p2247_p9, %p36_p13  ;;  %s2587_s27 = int_to_ptr.vmem [resolvable:$true] %s158_s27 }
  0x31   : > { %s2335_s5 = scalar_lea.hbm %s2581_s22, 128  ;;  %s2340_s8 = scalar_lea.hbm %s3045_s0, 256 }
  0x32   : > { %p2336_p0 = scmp.ne.s32.totalorder %s2581_s22, %s2335_s5  ;;  %p2337_p3 = pneg %p2583_p11 }
  0x33   : > { %p2341_p10 = scmp.lt.u32.totalorder %s2581_s22, %s3045_s0  ;;  %p2342_p1 = scmp.lt.u32.totalorder %s2340_s8, %s2335_s5 }
  0x34   : > { %p2338_p5 = pnand %p2337_p3, %p2336_p0  ;;  %p2344_p4 = scmp.lt.u32.totalorder %s2335_s5, %s2581_s22 }
  0x35   : > { %p2343_p2 = por %p2342_p1, %p2341_p10 }
  0x36   : > { %p2339_p7 = pneg %p2338_p5 }
  0x37   : > { %p2345_p6 = por %p2344_p4, %p2343_p2 }
  0x39   : > { %p2346_p9 = pnand %p2345_p6, %p2339_p7 }
  0x3b   : > { %2349 = shalt.err (!%p2346_p9)
}
  0x3c   : > { %s2350_s21 = scalar_lea.vmem %s2587_s27, 128  ;;  %s2438_s24 = smov [#allocation3]  }
  0x3d   : > { %p2351_p12 = scmp.ne.s32.totalorder %s2587_s27, %s2350_s21  ;;  %s2355_s25 = sshll.u32 %s2438_s24, 4  ;;  %s2356_s25 = int_to_ptr.vmem [resolvable:$false] %s2355_s25 }
  0x3e   : > { %s2357_s28 = scalar_lea.vmem %s2356_s25, 256  ;;  %p2358_p5 = scmp.lt.s32.totalorder %s2587_s27, %s2356_s25 }
  0x3f   : > { %p2353_p13 = pnand %p2351_p12, %p2337_p3  ;;  %p2359_p10 = scmp.lt.s32.totalorder %s2357_s28, %s2350_s21 }
  0x41   : > { %p2354_p0 = pneg %p2353_p13  ;;  %p2360_p1 = por %p2359_p10, %p2358_p5 }
  0x43   : > { %p2361_p2 = pnand %p2360_p1, %p2354_p0 }
  0x45   : > { %2364 = shalt.err (!%p2361_p2)
}
  0x46   : > { %2241 = dma.hbm_to_vmem [thread:$0]  (!%p2583_p11), %s2581_s22, 128, %s2587_s27, %s147_s4  }
  0x47   : > { %p3064_p7 = scmp.ne.s32.totalorder %s3055_s20, 0 }
  0x48   : > { %s2617_s29 = sand.u32 (!%p3064_p7), 1, %s2427_s13   ;;  %p3065_p3 = scmp.ne.s32.totalorder (!%p3064_p7), %s3053_s18, 0 }
  0x49   : > { %167 = sbr.rel (%p3064_p7) target bundleno = 1284 (0x504), region = 32  ;;  %s3052_s26 = sshll.u32 (!%p3064_p7), %s2617_s29, 3 }
  0x4a   : > { %s170_s5 = scalar_lea.sflag (!%p3064_p7), [#allocation4], %s2617_s29  ;;  %s173_s6 = scalar_lea.vmem (!%p3064_p7), [#allocation3], %s3052_s26 }
  0x50   : > { %2410 = dma.done.wait (%p3065_p3), %s170_s5, 128  }
  0x51   : > { %2412 = vsyncadd (%p3065_p3), %s170_s5, 4294967168  ;;  %p3066_p11 = scmp.eq.s32.totalorder %s2497_s16, 0 }
  0x53   : > { %2414 = dma.done.wait (%p3066_p11), [#allocation7], 64   ;;  %p3067_p4 = pmov %p3066_p11 }
  0x54   : > { %v2439_v0 = vmov 0.0   ;;  %v2635_v1 = vld [vmem:[#allocation6] sm:$0xf]  ;;  %v2637_v2 = vld [vmem:[%s173_s6] sm:$0xff]  ;;  %s2440_s18 = smov 124   ;;  %s2441_s20 = smov 112   ;;  %v204_v12 = vlaneseq }
  0x55   : > { %2416 = vsyncadd (%p3067_p4), [#allocation7], 4294967232  ;;  %200 = vst [vmem:[#allocation2] sm:$0xf] %v2439_v0  ;;  %431 = vmatprep.mubr.f32.mxu0 %v2439_v0  ;;  %1322 = vmatprep.mubr.f32.mxu1 %v2439_v0  ;;  %s2442_s22 = smov 16   ;;  %s2443_s27 = smov 17   ;;  %v2652_v6 = vcombine.high %v2637_v2, %v2637_v2 }
  0x56   : > { %201 = vst [vmem:[#allocation2 + $0xc] sm:$0xf] %v2439_v0  ;;  %355 = vrot.lane.b32.xlu1 %v2635_v1, %s2440_s18  ;;  %203 = vst [vmem:[#allocation2 + $0x4] sm:$0xff] %v2637_v2  ;;  %330 = vrot.lane.b32.xlu0 %v2637_v2, %s2441_s20  ;;  %s2444_s30 = smov 15   ;;  %s2445_s4 = smov 111   ;;  %v2688_v15 = vand.u32 127, %v204_v12 }
  0x57   : > { %s2446_s7 = smov 113   ;;  %s2447_s8 = smov 127   ;;  %v768_v8 = vld [vmem:[#allocation6] sm:$0xf]  ;;  %vm347_vm0 = vcmask 130048   ;;  %vm360_vm1 = vcmask 1043456  }
  0x58   : > { %s2448_s9 = smov 120   ;;  %s2449_s10 = smov 1   ;;  %v940_v9 = vld [vmem:[#allocation6] sm:$0xf]  ;;  %v2691_v18 = vadd.s32 128, %v2688_v15  ;;  %vm336_vm2 = vcmask 916480  }
  0x59   : > { %s2450_s21 = smov 116   ;;  %s2451_s24 = smov 108   ;;  %vm235_vm3 = vcmp.lt.s32.totalorder %v2688_v15, 16  ;;  %vm357_vm4 = vcmask 31744   ;;  %vm250_vm5 = vcmask 121856   ;;  %vm261_vm6 = vcmask 138240  }
  0x5a   : > { %s2452_s25 = smov 104   ;;  %s2453_s28 = smov 100   ;;  %v218_v22 = vand.u32 15, %v2691_v18  ;;  %v211_v34 = vand.u32 15, %v2688_v15  ;;  %vm307_vm8 = vcmask 908288   ;;  %vm318_vm9 = vcmask 924672  }
  0x5b   : > { %s2454_s5 = smov 96   ;;  %vm281_vm13 = vcmask 1039360   ;;  %vm292_vm14 = vcmask 7168   ;;  %vm238_vm15 = vcmp.ge.s32.totalorder %v2691_v18, 240 }
  0x5c   : > { %vm2711_vm7 = vcmp.eq.s32.totalorder %v218_v22, 0  ;;  %vm2726_vm10 = vcmp.eq.s32.totalorder %v211_v34, 0  ;;  %vm2731_vm11 = vcmp.eq.s32.totalorder %v211_v34, 15  ;;  %vm2738_vm12 = vcmp.eq.s32.totalorder %v218_v22, 15 }
  0x5d   : > { %v239_v3 = vld [vmem:[#allocation2] sm:$0xff]  ;;  %v240_v4 = vld [vmem:[#allocation2 + $0x8] sm:$0xf]  ;;  %v271_v7 = vld [vmem:[#allocation2 + $0xc] sm:$0xf] }
  0x5e   : > { %341 = vrot.lane.b32.xlu1 %v239_v3, %s2442_s22  ;;  %345 = vrot.lane.b32.xlu0 %v240_v4, %s2442_s22  ;;  %v243_v5 = vcombine.high %v239_v3, %v239_v3 }
  0x62   : > { %255 = vrot.lane.b32.xlu1 %v239_v3, %s2443_s27  ;;  %244 = vrot.lane.b32.xlu0 %v239_v3, %s2444_s30 }
  0x66   : > { %343 = vrot.lane.b32.xlu1 %v243_v5, %s2442_s22  ;;  %248 = vrot.lane.b32.xlu0 %v240_v4, %s2444_s30 }
  0x6a   : > { %246 = vrot.lane.b32.xlu1 %v243_v5, %s2444_s30  ;;  %332 = vrot.lane.b32.xlu0 %v2652_v6, %s2441_s20 }
  0x6e   : > { %259 = vrot.lane.b32.xlu1 %v240_v4, %s2443_s27  ;;  %257 = vrot.lane.b32.xlu0 %v243_v5, %s2443_s27 }
  0x72   : > { %303 = vrot.lane.b32.xlu1 %v2652_v6, %s2445_s4  ;;  %301 = vrot.lane.b32.xlu0 %v2637_v2, %s2445_s4 }
  0x76   : > { %314 = vrot.lane.b32.xlu1 %v2652_v6, %s2446_s7  ;;  %312 = vrot.lane.b32.xlu0 %v2637_v2, %s2446_s7 }
  0x7a   : > { %277 = vrot.lane.b32.xlu1 %v2652_v6, %s2447_s8  ;;  %519 = vrot.lane.b32.xlu0 %v2635_v1, %s2448_s9 }
  0x7e   : > { %288 = vrot.lane.b32.xlu1 %v243_v5, %s2449_s10  ;;  %279 = vrot.lane.b32.xlu0 %v271_v7, %s2447_s8 }
  0x82   : > { %275 = vrot.lane.b32.xlu1 %v2637_v2, %s2447_s8  ;;  %290 = vrot.lane.b32.xlu0 %v240_v4, %s2449_s10 }
  0x86   : > { %602 = vrot.lane.b32.xlu1 %v2635_v1, %s2450_s21  ;;  %286 = vrot.lane.b32.xlu0 %v239_v3, %s2449_s10 }
  0x8a   : > { %770 = vrot.lane.b32.xlu1 %v768_v8, %s2451_s24  ;;  %685 = vrot.lane.b32.xlu0 %v2635_v1, %s2441_s20 }
  0x8e   : > { %316 = vrot.lane.b32.xlu1 %v271_v7, %s2446_s7  ;;  %305 = vrot.lane.b32.xlu0 %v271_v7, %s2445_s4 }
  0x92   : > { %334 = vrot.lane.b32.xlu1 %v271_v7, %s2441_s20  ;;  %855 = vrot.lane.b32.xlu0 %v768_v8, %s2452_s25 }
  0x96   : > { %942 = vrot.lane.b32.xlu0 %v940_v9, %s2453_s28  ;;  %1027 = vrot.lane.b32.xlu1 %v940_v9, %s2454_s5 }
  0xc8   : > { %v356_v10 = vpop.permute.xlu1 %355  ;;  %v331_v11 = vpop.permute.xlu0 %330 }
  0xd0   : > { %v342_v13 = vpop.permute.xlu1 %341  ;;  %v346_v14 = vpop.permute.xlu0 %345 }
  0xd4   : > { %v256_v16 = vpop.permute.xlu1 %255  ;;  %v245_v17 = vpop.permute.xlu0 %244 }
  0xd8   : > { %v344_v19 = vpop.permute.xlu1 %343  ;;  %v249_v20 = vpop.permute.xlu0 %248 }
  0xd9   : > { %v2694_v21 = vsel %vm347_vm0, %v344_v19, %v346_v14  ;;  %v348_v25 = vsel %vm347_vm0, %v342_v13, %v344_v19 }
  0xda   : > { %2133 = vmatprep.subr.msk.mxu0 %vm360_vm1, %v2694_v21 }
  0xdc   : > { %v247_v23 = vpop.permute.xlu1 %246  ;;  %v2700_v24 = vpop.permute.xlu0 %332 }
  0xdd   : > { %v2705_v26 = vsel %vm336_vm2, %v331_v11, %v2700_v24  ;;  %v252_v31 = vsel %vm250_vm5, %v247_v23, %v249_v20  ;;  %v251_v42 = vsel %vm250_vm5, %v245_v17, %v247_v23 }
  0xde   : > { %v352_v27 = vsel %vm235_vm3, %v2705_v26, %v348_v25 }
  0xdf   : > { %2134 = vmatpush1.msk.msra.mxu0 %vm360_vm1, %v352_v27 }
  0xe0   : > { %v260_v29 = vpop.permute.xlu1 %259  ;;  %v258_v30 = vpop.permute.xlu0 %257  ;;  %2135 = vmatmul.mubr.msk.f32.vlgmr.msra.gmra.mrb[0].mxu0 %vm357_vm4, %v356_v10 }
  0xe1   : > { %v263_v32 = vsel %vm261_vm6, %v258_v30, %v260_v29  ;;  %510 = vmatprep.mubr.f32.mxu0 %v2439_v0  ;;  %v262_v38 = vsel %vm261_vm6, %v256_v16, %v258_v30 }
  0xe2   : > { %v2721_v33 = vsel %vm2711_vm7, %v252_v31, %v263_v32  ;;  %v266_v46 = vsel %vm2726_vm10, %v251_v42, %v262_v38  ;;  %v268_v50 = vsel %vm2731_vm11, %v262_v38, %v251_v42  ;;  %v269_v53 = vsel %vm2738_vm12, %v263_v32, %v252_v31 }
  0xe3   : > { %2136 = vmatprep.subr.msk.mxu0 %vm360_vm1, %v2721_v33 }
  0xe4   : > { %v304_v35 = vpop.permute.xlu1 %303  ;;  %v302_v36 = vpop.permute.xlu0 %301 }
  0xe5   : > { %v308_v43 = vsel %vm307_vm8, %v302_v36, %v304_v35  ;;  %v2830_v36 = vld [vmem:[%s3047_s2] sm:$0xf] }
  0xe8   : > { %v315_v40 = vpop.permute.xlu1 %314  ;;  %v313_v41 = vpop.permute.xlu0 %312 }
  0xe9   : > { %v319_v44 = vsel %vm318_vm9, %v313_v41, %v315_v40 }
  0xea   : > { %v323_v47 = vsel %vm2726_vm10, %v308_v43, %v319_v44  ;;  %v2748_v48 = vsel %vm2731_vm11, %v319_v44, %v308_v43 }
  0xeb   : > { %v327_v49 = vsel %vm235_vm3, %v323_v47, %v266_v46  ;;  %v517_v54 = vsel %vm235_vm3, %v2748_v48, %v268_v50 }
  0xec   : > { %v278_v51 = vpop.permute.xlu1 %277  ;;  %v520_v52 = vpop.permute.xlu0 %519  ;;  %2137 = vmatpush1.msk.msra.mxu0 %vm360_vm1, %v327_v49 }
  0xed   : > { %2138 = vmatmul.mubr.msk.f32.vlgmr.msra.gmra.mrb[0].mxu0 %vm357_vm4, %v2635_v1  ;;  %2139 = vmatprep.subr.msk.mxu0 %vm360_vm1, %v269_v53 }
  0xee   : > { %2140 = vmatpush1.msk.msra.mxu0 %vm360_vm1, %v517_v54  ;;  %593 = vmatprep.mubr.f32.mxu0 %v2439_v0 }
  0xf0   : > { %v289_v55 = vpop.permute.xlu1 %288  ;;  %v280_v56 = vpop.permute.xlu0 %279 }
  0xf1   : > { %v283_v59 = vsel %vm281_vm13, %v278_v51, %v280_v56 }
  0xf4   : > { %v276_v57 = vpop.permute.xlu1 %275  ;;  %v291_v58 = vpop.permute.xlu0 %290 }
  0xf5   : > { %v294_v60 = vsel %vm292_vm14, %v289_v55, %v291_v58  ;;  %2141 = vmatmul.mubr.msk.f32.vlgmr.msra.gmra.mrb[0].mxu0 %vm357_vm4, %v520_v52  ;;  %v282_v1 = vsel %vm281_vm13, %v276_v57, %v278_v51 }
  0xf6   : > { %v298_v61 = vsel %vm2711_vm7, %v283_v59, %v294_v60  ;;  %676 = vmatprep.mubr.f32.mxu0 %v2439_v0  ;;  %v300_v8 = vsel %vm2738_vm12, %v294_v60, %v283_v59  ;;  %v1170_v60 = vld [vmem:[#allocation2 + $0xc] sm:$0xf] }
  0xf7   : > { %2142 = vmatprep.subr.msk.mxu0 %vm360_vm1, %v298_v61  ;;  %v1827_v61 = vld [vmem:[%s3047_s2] sm:$0xf] }
  0xf8   : > { %v603_v62 = vpop.permute.xlu1 %602  ;;  %v287_v63 = vpop.permute.xlu0 %286 }
  0xf9   : > { %v293_v3 = vsel %vm292_vm14, %v287_v63, %v289_v55 }
  0xfa   : > { %v297_v4 = vsel %vm2726_vm10, %v282_v1, %v293_v3  ;;  %v299_v13 = vsel %vm2731_vm11, %v293_v3, %v282_v1 }
  0xfb   : > { %2143 = vmatpush1.msk.msra.mxu0 %vm360_vm1, %v297_v4 }
  0xfc   : > { %v771_v5 = vpop.permute.xlu1 %770  ;;  %v686_v7 = vpop.permute.xlu0 %685  ;;  %2145 = vmatprep.subr.msk.mxu0 %vm360_vm1, %v2652_v6 }
  0xfd   : > { %2144 = vmatmul.mubr.msk.f32.vlgmr.msra.gmra.mrb[0].mxu0 %vm357_vm4, %v603_v62 }
  0xfe   : > { %2146 = vmatpush1.msk.msra.mxu0 %vm360_vm1, %v2637_v2  ;;  %759 = vmatprep.mubr.f32.mxu0 %v2439_v0 }
  0xff   : > { %2148 = vmatprep.subr.msk.mxu0 %vm360_vm1, %v300_v8 }
 0x100   : > { %v317_v9 = vpop.permute.xlu1 %316  ;;  %v306_v10 = vpop.permute.xlu0 %305 }
 0x101   : > { %v320_v11 = vsel %vm318_vm9, %v315_v40, %v317_v9  ;;  %v309_v12 = vsel %vm307_vm8, %v304_v35, %v306_v10 }
 0x102   : > { %v324_v6 = vsel %vm2711_vm7, %v309_v12, %v320_v11  ;;  %v326_v22 = vsel %vm2738_vm12, %v320_v11, %v309_v12 }
 0x103   : > { %v854_v14 = vsel %vm238_vm15, %v2721_v33, %v324_v6  ;;  %v1026_v23 = vsel %vm238_vm15, %v269_v53, %v326_v22 }
 0x104   : > { %v335_v16 = vpop.permute.xlu1 %334  ;;  %v856_v20 = vpop.permute.xlu0 %855 }
 0x105   : > { %2147 = vmatmul.mubr.msk.f32.vlgmr.msra.gmra.mrb[0].mxu0 %vm357_vm4, %v686_v7  ;;  %v338_v17 = vsel %vm336_vm2, %v2700_v24, %v335_v16 }
 0x106   : > { %2149 = vmatpush1.msk.msra.mxu0 %vm360_vm1, %v299_v13  ;;  %844 = vmatprep.mubr.f32.mxu0 %v2439_v0  ;;  %v939_v19 = vsel %vm238_vm15, %v2694_v21, %v338_v17 }
 0x107   : > { %2151 = vmatprep.subr.msk.mxu0 %vm360_vm1, %v854_v14 }
 0x108   : > { %v943_v21 = vpop.permute.xlu0 %942  ;;  %v1028_v24 = vpop.permute.xlu1 %1027 }
 0x10d   : > { %2150 = vmatmul.mubr.msk.f32.vlgmr.msra.gmra.mrb[0].mxu0 %vm357_vm4, %v771_v5 }
 0x10e   : > { %2152 = vmatpush1.msk.msra.mxu0 %vm360_vm1, %v323_v47  ;;  %929 = vmatprep.mubr.f32.mxu0 %v2439_v0 }
 0x10f   : > { %2154 = vmatprep.subr.msk.mxu0 %vm360_vm1, %v939_v19 }
 0x115   : > { %2153 = vmatmul.mubr.msk.f32.vlgmr.msra.gmra.mrb[0].mxu0 %vm357_vm4, %v856_v20 }
 0x116   : > { %2155 = vmatpush1.msk.msra.mxu0 %vm360_vm1, %v2705_v26  ;;  %1016 = vmatprep.mubr.f32.mxu0 %v2439_v0 }
 0x117   : > { %2157 = vmatprep.subr.msk.mxu0 %vm360_vm1, %v1026_v23 }
 0x11d   : > { %2156 = vmatmul.mubr.msk.f32.vlgmr.msra.gmra.mrb[0].mxu0 %vm357_vm4, %v943_v21 }
 0x11e   : > { %2158 = vmatpush1.msk.msra.mxu0 %vm360_vm1, %v2748_v48  ;;  %1101 = vmatprep.mubr.f32.mxu0 %v2439_v0 }
 0x125   : > { %2159 = vmatmul.mubr.msk.f32.vlgmr.msra.gmra.mrb[0].mxu0 %vm357_vm4, %v1028_v24 }
 0x1f8   : > { %v1103_v25 = vpop.f32.mrb[0].mxu0 }
 0x1f9   : > { %v1116_v26 = vmul.f32 %v1103_v25, %v1103_v25  ;;  %v1105_v27 = vpop.f32.mrb[1].mxu0  ;;  %v1110_v29 = vsel %vm360_vm1, %v1103_v25, 0.0 }
 0x1fa   : > { %v1111_v30 = vsel %vm360_vm1, %v1105_v27, 0.0  ;;  %v1117_v31 = vmul.f32 %v1105_v27, %v1105_v27 }
 0x1fb   : > { %v1112_v32 = vadd.f32 %v1111_v30, %v1110_v29  ;;  %v1118_v33 = vsel %vm360_vm1, %v1116_v26, 0.0 }
 0x1fc   : > { %v1119_v34 = vsel %vm360_vm1, %v1117_v31, 0.0 }
 0x1fd   : > { %1113 = vadd.xlane.f32.xlu0 %v1112_v32  ;;  %v1120_v35 = vadd.f32 %v1119_v34, %v1118_v33 }
 0x1ff   : > { %1121 = vadd.xlane.f32.xlu1 %v1120_v35 }
 0x210   : > { %1248 = vrot.lane.b32.xlu1 %v2830_v36, %s2440_s18 }
 0x28a   : > { %v1114_v38 = vpop.xlane.xlu0 %1113 }
 0x28b   : > { %v1115_v40 = vmul.f32 0.00390625, %v1114_v38 }
 0x28c   : > { %v1122_v41 = vpop.xlane.xlu1 %1121 }
 0x28d   : > { %v1123_v42 = vmul.f32 0.00390625, %v1122_v41  ;;  %v1124_v43 = vmul.f32 %v1115_v40, %v1115_v40  ;;  %v1127_v48 = vsub.f32 %v1103_v25, %v1115_v40  ;;  %v1128_v49 = vsub.f32 %v1105_v27, %v1115_v40 }
 0x28f   : > { %v1125_v44 = vsub.f32 %v1123_v42, %v1124_v43 }
 0x290   : > { %v1249_v62 = vpop.permute.xlu1 %1248 }
 0x291   : > { %v1126_v46 = vmax.f32 %v1125_v44, 0.0 }
 0x293   : > { %v1129_v47 = vadd.f32 1e-05, %v1126_v46 }
 0x295   : > { %2302 = vrsqrt.f32 %v1129_v47 }
 0x29f   : > { %v2303_v50 = vpop.eup %2302 }
 0x2a0   : > { %v2834_v51 = vmul.f32 %v2303_v50, %v1127_v48  ;;  %v1132_v52 = vmul.f32 %v2303_v50, %v1128_v49 }
 0x2a2   : > { %v1133_v53 = vmax.f32 %v2834_v51, 0.0  ;;  %v2837_v54 = vmax.f32 %v1132_v52, 0.0 }
 0x2a4   : > { %v1137_v55 = vcombine.low %v1133_v53, %v2837_v54  ;;  %v2306_v58 = vcombine.low %v2837_v54, %v2837_v54 }
 0x2a6   : > { %1139 = vst [vmem:[#allocation2 + $0x4] sm:$0xff] %v1137_v55  ;;  %1225 = vrot.lane.b32.xlu0 %v1137_v55, %s2441_s20 }
 0x2ad   : > { %v1140_v56 = vld [vmem:[#allocation2] sm:$0xff]  ;;  %v1141_v57 = vld [vmem:[#allocation2 + $0x8] sm:$0xf] }
 0x2ae   : > { %1155 = vrot.lane.b32.xlu1 %v1140_v56, %s2443_s27  ;;  %1235 = vrot.lane.b32.xlu0 %v1140_v56, %s2442_s22  ;;  %v1144_v59 = vcombine.high %v1140_v56, %v1140_v56 }
 0x2b2   : > { %1159 = vrot.lane.b32.xlu1 %v1141_v57, %s2443_s27  ;;  %1239 = vrot.lane.b32.xlu0 %v1141_v57, %s2442_s22 }
 0x2b6   : > { %1227 = vrot.lane.b32.xlu1 %v2306_v58, %s2441_s20  ;;  %1145 = vrot.lane.b32.xlu0 %v1140_v56, %s2444_s30 }
 0x2ba   : > { %1237 = vrot.lane.b32.xlu1 %v1144_v59, %s2442_s22  ;;  %1149 = vrot.lane.b32.xlu0 %v1141_v57, %s2444_s30  ;;  %s3076_s22 = sshll.u32 %s2617_s29, 3 }
 0x2be   : > { %1147 = vrot.lane.b32.xlu1 %v1144_v59, %s2444_s30  ;;  %1198 = vrot.lane.b32.xlu0 %v1137_v55, %s2445_s4 }
 0x2c2   : > { %1200 = vrot.lane.b32.xlu1 %v2306_v58, %s2445_s4  ;;  %1157 = vrot.lane.b32.xlu0 %v1144_v59, %s2443_s27  ;;  %s199_s27 = scalar_lea.vmem [#allocation8], %s3076_s22 }
 0x2c3   : > { %s2042_s30 = sshll.u32 %s199_s27, 4  ;;  %s3003_s30 = int_to_ptr.vmem [resolvable:$true] %s2042_s30 }
 0x2c6   : > { %1210 = vrot.lane.b32.xlu1 %v2306_v58, %s2446_s7  ;;  %1208 = vrot.lane.b32.xlu0 %v1137_v55, %s2446_s7 }
 0x2ca   : > { %1174 = vrot.lane.b32.xlu1 %v1137_v55, %s2447_s8  ;;  %1410 = vrot.lane.b32.xlu0 %v2830_v36, %s2448_s9  ;;  %s2028_s9 = scalar_lea.sflag [#allocation5], %s2617_s29 }
 0x2ce   : > { %1176 = vrot.lane.b32.xlu1 %v2306_v58, %s2447_s8  ;;  %1178 = vrot.lane.b32.xlu0 %v1170_v60, %s2447_s8 }
 0x2d2   : > { %1186 = vrot.lane.b32.xlu1 %v1144_v59, %s2449_s10  ;;  %1188 = vrot.lane.b32.xlu0 %v1141_v57, %s2449_s10 }
 0x2d6   : > { %1493 = vrot.lane.b32.xlu1 %v2830_v36, %s2450_s21  ;;  %1184 = vrot.lane.b32.xlu0 %v1140_v56, %s2449_s10  ;;  %s2365_s10 = scalar_lea.vmem %s3003_s30, 128 }
 0x2d7   : > { %p2366_p6 = scmp.ne.s32.totalorder %s3003_s30, %s2365_s10 }
 0x2d9   : > { %p2367_p9 = pnand %p2366_p6, %p2568_p8 }
 0x2da   : > { %1657 = vrot.lane.b32.xlu1 %v2830_v36, %s2451_s24  ;;  %1576 = vrot.lane.b32.xlu0 %v2830_v36, %s2441_s20 }
 0x2db   : > { %p2368_p12 = pneg %p2367_p9 }
 0x2de   : > { %1212 = vrot.lane.b32.xlu1 %v1170_v60, %s2446_s7  ;;  %1202 = vrot.lane.b32.xlu0 %v1170_v60, %s2445_s4 }
 0x2e2   : > { %1229 = vrot.lane.b32.xlu1 %v1170_v60, %s2441_s20  ;;  %1742 = vrot.lane.b32.xlu0 %v2830_v36, %s2452_s25  ;;  %s2193_s20 = sshll.u32 %s2497_s16, 7  ;;  %s2455_s16 = smov [#allocation8]  }
 0x2e3   : > { %s3001_s8 = scalar_lea.hbm %s3048_s3, %s2193_s20  ;;  %s2369_s21 = sshll.u32 %s2455_s16, 4  ;;  %s2370_s21 = int_to_ptr.vmem [resolvable:$false] %s2369_s21 }
 0x2e4   : > { %s2371_s24 = scalar_lea.vmem %s2370_s21, 256  ;;  %p2372_p13 = scmp.lt.s32.totalorder %s3003_s30, %s2370_s21 }
 0x2e5   : > { %p2373_p0 = scmp.lt.s32.totalorder %s2371_s24, %s2365_s10 }
 0x2e6   : > { %1829 = vrot.lane.b32.xlu0 %v1827_v61, %s2453_s28  ;;  %1914 = vrot.lane.b32.xlu1 %v1827_v61, %s2454_s5 }
 0x2e7   : > { %p2374_p5 = por %p2373_p0, %p2372_p13 }
 0x2e9   : > { %p2375_p10 = pnand %p2374_p5, %p2368_p12 }
 0x318   : > { %v1226_v63 = vpop.permute.xlu0 %1225 }
 0x320   : > { %v1156_v1 = vpop.permute.xlu1 %1155  ;;  %v1236_v3 = vpop.permute.xlu0 %1235 }
 0x324   : > { %v1160_v4 = vpop.permute.xlu1 %1159  ;;  %v1240_v5 = vpop.permute.xlu0 %1239 }
 0x328   : > { %v2883_v7 = vpop.permute.xlu1 %1227  ;;  %v1146_v8 = vpop.permute.xlu0 %1145 }
 0x329   : > { %v2887_v11 = vsel %vm336_vm2, %v1226_v63, %v2883_v7 }
 0x32c   : > { %v1238_v9 = vpop.permute.xlu1 %1237  ;;  %v1150_v10 = vpop.permute.xlu0 %1149 }
 0x32d   : > { %v1241_v12 = vsel %vm347_vm0, %v1236_v3, %v1238_v9  ;;  %v2891_v6 = vsel %vm347_vm0, %v1238_v9, %v1240_v5 }
 0x32e   : > { %2160 = vmatprep.subr.msk.mxu1 %vm360_vm1, %v2891_v6  ;;  %v1245_v13 = vsel %vm235_vm3, %v2887_v11, %v1241_v12 }
 0x32f   : > { %2161 = vmatpush1.msk.msra.mxu1 %vm360_vm1, %v1245_v13 }
 0x330   : > { %2162 = vmatmul.mubr.msk.f32.vlgmr.msra.gmra.mrb[0].mxu1 %vm357_vm4, %v1249_v62  ;;  %v1148_v14 = vpop.permute.xlu1 %1147  ;;  %v1199_v16 = vpop.permute.xlu0 %1198 }
 0x331   : > { %1401 = vmatprep.mubr.f32.mxu1 %v2439_v0  ;;  %v1152_v20 = vsel %vm250_vm5, %v1148_v14, %v1150_v10  ;;  %v1151_v26 = vsel %vm250_vm5, %v1146_v8, %v1148_v14 }
 0x334   : > { %v1201_v17 = vpop.permute.xlu1 %1200  ;;  %v1158_v19 = vpop.permute.xlu0 %1157 }
 0x335   : > { %v1162_v22 = vsel %vm261_vm6, %v1158_v19, %v1160_v4  ;;  %v1161_v21 = vsel %vm261_vm6, %v1156_v1, %v1158_v19  ;;  %v1204_v27 = vsel %vm307_vm8, %v1199_v16, %v1201_v17 }
 0x336   : > { %v1166_v23 = vsel %vm2711_vm7, %v1152_v20, %v1162_v22  ;;  %v1165_v30 = vsel %vm2726_vm10, %v1151_v26, %v1161_v21  ;;  %v1167_v34 = vsel %vm2731_vm11, %v1161_v21, %v1151_v26  ;;  %v1168_v40 = vsel %vm2738_vm12, %v1162_v22, %v1152_v20 }
 0x337   : > { %2163 = vmatprep.subr.msk.mxu1 %vm360_vm1, %v1166_v23 }
 0x338   : > { %v1211_v24 = vpop.permute.xlu1 %1210  ;;  %v1209_v25 = vpop.permute.xlu0 %1208 }
 0x339   : > { %v1214_v29 = vsel %vm318_vm9, %v1209_v25, %v1211_v24 }
 0x33a   : > { %v1218_v31 = vsel %vm2726_vm10, %v1204_v27, %v1214_v29  ;;  %v2916_v32 = vsel %vm2731_vm11, %v1214_v29, %v1204_v27 }
 0x33b   : > { %v1222_v33 = vsel %vm235_vm3, %v1218_v31, %v1165_v30  ;;  %v1408_v41 = vsel %vm235_vm3, %v2916_v32, %v1167_v34 }
 0x33c   : > { %v1175_v35 = vpop.permute.xlu1 %1174  ;;  %v1411_v38 = vpop.permute.xlu0 %1410  ;;  %2164 = vmatpush1.msk.msra.mxu1 %vm360_vm1, %v1222_v33 }
 0x33d   : > { %2165 = vmatmul.mubr.msk.f32.vlgmr.msra.gmra.mrb[0].mxu1 %vm357_vm4, %v2830_v36  ;;  %2166 = vmatprep.subr.msk.mxu1 %vm360_vm1, %v1168_v40 }
 0x33e   : > { %2167 = vmatpush1.msk.msra.mxu1 %vm360_vm1, %v1408_v41  ;;  %1484 = vmatprep.mubr.f32.mxu1 %v2439_v0 }
 0x340   : > { %v1177_v42 = vpop.permute.xlu1 %1176  ;;  %v1179_v43 = vpop.permute.xlu0 %1178 }
 0x341   : > { %v1181_v47 = vsel %vm281_vm13, %v1177_v42, %v1179_v43  ;;  %v1180_v50 = vsel %vm281_vm13, %v1175_v35, %v1177_v42 }
 0x344   : > { %v1187_v44 = vpop.permute.xlu1 %1186  ;;  %v1189_v46 = vpop.permute.xlu0 %1188 }
 0x345   : > { %v1191_v48 = vsel %vm292_vm14, %v1187_v44, %v1189_v46  ;;  %2168 = vmatmul.mubr.msk.f32.vlgmr.msra.gmra.mrb[0].mxu1 %vm357_vm4, %v1411_v38 }
 0x346   : > { %v1195_v36 = vsel %vm2711_vm7, %v1181_v47, %v1191_v48  ;;  %1567 = vmatprep.mubr.f32.mxu1 %v2439_v0  ;;  %v1197_v58 = vsel %vm2738_vm12, %v1191_v48, %v1181_v47 }
 0x347   : > { %2169 = vmatprep.subr.msk.mxu1 %vm360_vm1, %v1195_v36 }
 0x348   : > { %v1494_v15 = vpop.permute.xlu1 %1493  ;;  %v1185_v49 = vpop.permute.xlu0 %1184 }
 0x349   : > { %v1190_v52 = vsel %vm292_vm14, %v1185_v49, %v1187_v44 }
 0x34a   : > { %v1194_v55 = vsel %vm2726_vm10, %v1180_v50, %v1190_v52  ;;  %v1196_v51 = vsel %vm2731_vm11, %v1190_v52, %v1180_v50 }
 0x34b   : > { %2170 = vmatpush1.msk.msra.mxu1 %vm360_vm1, %v1194_v55 }
 0x34c   : > { %v1658_v56 = vpop.permute.xlu1 %1657  ;;  %v1577_v57 = vpop.permute.xlu0 %1576  ;;  %2172 = vmatprep.subr.msk.mxu1 %vm360_vm1, %v2837_v54 }
 0x34d   : > { %2171 = vmatmul.mubr.msk.f32.vlgmr.msra.gmra.mrb[0].mxu1 %vm357_vm4, %v1494_v15 }
 0x34e   : > { %2173 = vmatpush1.msk.msra.mxu1 %vm360_vm1, %v1133_v53  ;;  %1648 = vmatprep.mubr.f32.mxu1 %v2439_v0 }
 0x34f   : > { %2175 = vmatprep.subr.msk.mxu1 %vm360_vm1, %v1197_v58 }
 0x350   : > { %v1213_v37 = vpop.permute.xlu1 %1212  ;;  %v1203_v59 = vpop.permute.xlu0 %1202 }
 0x351   : > { %v1215_v60 = vsel %vm318_vm9, %v1211_v24, %v1213_v37  ;;  %v1205_v61 = vsel %vm307_vm8, %v1201_v17, %v1203_v59 }
 0x352   : > { %v1219_v54 = vsel %vm2711_vm7, %v1205_v61, %v1215_v60  ;;  %v1221_v1 = vsel %vm2738_vm12, %v1215_v60, %v1205_v61 }
 0x353   : > { %v1741_v53 = vsel %vm238_vm15, %v1166_v23, %v1219_v54  ;;  %v1913_v3 = vsel %vm238_vm15, %v1168_v40, %v1221_v1 }
 0x354   : > { %v1230_v62 = vpop.permute.xlu1 %1229  ;;  %v1743_v39 = vpop.permute.xlu0 %1742 }
 0x355   : > { %2174 = vmatmul.mubr.msk.f32.vlgmr.msra.gmra.mrb[0].mxu1 %vm357_vm4, %v1577_v57  ;;  %v1232_v63 = vsel %vm336_vm2, %v2883_v7, %v1230_v62 }
 0x356   : > { %2176 = vmatpush1.msk.msra.mxu1 %vm360_vm1, %v1196_v51  ;;  %1731 = vmatprep.mubr.f32.mxu1 %v2439_v0  ;;  %v1826_v28 = vsel %vm238_vm15, %v2891_v6, %v1232_v63 }
 0x357   : > { %2178 = vmatprep.subr.msk.mxu1 %vm360_vm1, %v1741_v53 }
 0x358   : > { %v1830_v4 = vpop.permute.xlu0 %1829  ;;  %v1915_v45 = vpop.permute.xlu1 %1914 }
 0x35d   : > { %2177 = vmatmul.mubr.msk.f32.vlgmr.msra.gmra.mrb[0].mxu1 %vm357_vm4, %v1658_v56 }
 0x35e   : > { %2179 = vmatpush1.msk.msra.mxu1 %vm360_vm1, %v1218_v31  ;;  %1816 = vmatprep.mubr.f32.mxu1 %v2439_v0 }
 0x35f   : > { %2181 = vmatprep.subr.msk.mxu1 %vm360_vm1, %v1826_v28 }
 0x365   : > { %2180 = vmatmul.mubr.msk.f32.vlgmr.msra.gmra.mrb[0].mxu1 %vm357_vm4, %v1743_v39 }
 0x366   : > { %2182 = vmatpush1.msk.msra.mxu1 %vm360_vm1, %v2887_v11  ;;  %1903 = vmatprep.mubr.f32.mxu1 %v2439_v0 }
 0x367   : > { %2184 = vmatprep.subr.msk.mxu1 %vm360_vm1, %v1913_v3 }
 0x36d   : > { %2183 = vmatmul.mubr.msk.f32.vlgmr.msra.gmra.mrb[0].mxu1 %vm357_vm4, %v1830_v4 }
 0x36e   : > { %2185 = vmatpush1.msk.msra.mxu1 %vm360_vm1, %v2916_v32  ;;  %1988 = vmatprep.mubr.f32.mxu1 %v2439_v0 }
 0x375   : > { %2186 = vmatmul.mubr.msk.f32.vlgmr.msra.gmra.mrb[0].mxu1 %vm357_vm4, %v1915_v45 }
 0x448   : > { %v1990_v5 = vpop.f32.mrb[0].mxu1 }
 0x449   : > { %v2003_v7 = vmul.f32 %v1990_v5, %v1990_v5  ;;  %v1992_v8 = vpop.f32.mrb[1].mxu1  ;;  %v1997_v18 = vsel %vm360_vm1, %v1990_v5, 0.0 }
 0x44a   : > { %v1998_v9 = vsel %vm360_vm1, %v1992_v8, 0.0  ;;  %v2004_v10 = vmul.f32 %v1992_v8, %v1992_v8 }
 0x44b   : > { %v1999_v11 = vadd.f32 %v1998_v9, %v1997_v18  ;;  %v2005_v12 = vsel %vm360_vm1, %v2003_v7, 0.0 }
 0x44c   : > { %v2006_v6 = vsel %vm360_vm1, %v2004_v10, 0.0 }
 0x44d   : > { %2000 = vadd.xlane.f32.xlu0 %v1999_v11  ;;  %v2007_v13 = vadd.f32 %v2006_v6, %v2005_v12 }
 0x44f   : > { %2008 = vadd.xlane.f32.xlu1 %v2007_v13 }
 0x4da   : > { %v2001_v0 = vpop.xlane.xlu0 %2000 }
 0x4db   : > { %v2002_v14 = vmul.f32 0.00390625, %v2001_v0 }
 0x4dc   : > { %v2009_v16 = vpop.xlane.xlu1 %2008 }
 0x4dd   : > { %v2010_v17 = vmul.f32 0.00390625, %v2009_v16  ;;  %v2011_v19 = vmul.f32 %v2002_v14, %v2002_v14  ;;  %v2014_v21 = vsub.f32 %v1990_v5, %v2002_v14  ;;  %v2015_v24 = vsub.f32 %v1992_v8, %v2002_v14 }
 0x4df   : > { %v2012_v20 = vsub.f32 %v2010_v17, %v2011_v19 }
 0x4e1   : > { %v2013_v22 = vmax.f32 %v2012_v20, 0.0 }
 0x4e3   : > { %v2016_v23 = vadd.f32 1e-05, %v2013_v22 }
 0x4e5   : > { %2304 = vrsqrt.f32 %v2016_v23 }
 0x4ef   : > { %v2305_v25 = vpop.eup %2304 }
 0x4f0   : > { %v2018_v26 = vmul.f32 %v2305_v25, %v2014_v21  ;;  %v2019_v27 = vmul.f32 %v2305_v25, %v2015_v24 }
 0x4f2   : > { %v2023_v29 = vcombine.low %v2018_v26, %v2019_v27 }
 0x4f4   : > { %v2025_v30 = vadd.f32 %v2023_v29, %v2637_v2 }
 0x4f6   : > { %2026 = vst [vmem:[%s199_s27] sm:$0xff] %v2025_v30 }
 0x4f7   : > { %2378 = shalt.err (!%p2375_p10)
}
 0x4f8   : > { %s2379_s29 = scalar_lea.hbm %s3001_s8, 128  ;;  %s2383_s5 = scalar_lea.hbm %s3048_s3, 256 }
 0x4f9   : > { %p2380_p1 = scmp.ne.s32.totalorder %s3001_s8, %s2379_s29  ;;  %p2384_p3 = scmp.lt.u32.totalorder %s3001_s8, %s3048_s3 }
 0x4fa   : > { %p2385_p11 = scmp.lt.u32.totalorder %s2383_s5, %s2379_s29  ;;  %p2387_p6 = scmp.lt.u32.totalorder %s2379_s29, %s3001_s8 }
 0x4fb   : > { %p2381_p2 = pnand %p2380_p1, %p2568_p8 }
 0x4fc   : > { %p2386_p4 = por %p2385_p11, %p2384_p3 }
 0x4fd   : > { %p2382_p7 = pneg %p2381_p2 }
 0x4fe   : > { %p2388_p9 = por %p2387_p6, %p2386_p4 }
 0x500   : > { %p2389_p12 = pnand %p2388_p9, %p2382_p7 }
 0x502   : > { %2392 = shalt.err (!%p2389_p12)
}
 0x503   : > { %2232 = dma.vmem_to_hbm [thread:$0]  (%p2568_p8), %s3003_s30, 128, %s3001_s8, %s2028_s9  }
 0x504 PF: > { %s2054_s18 = sand.u32 1, %s2423_s12   ;;  %p3077_p13 = scmp.ne.s32.totalorder %s3054_s19, 0 }
 0x505   : > { %p3078_p0 = scmp.ge.s32.totalorder %s2435_s15, 2  ;;  %s2055_s20 = scalar_lea.sflag [#allocation5], %s2054_s18 }
 0x507   : > { %p2243_p5 = pnand %p3078_p0, %p3077_p13 }
 0x509   : > { %2418 = dma.done.wait (!%p2243_p5), %s2055_s20, 128  }
 0x50a   : > { %2420 = vsyncadd (!%p2243_p5), %s2055_s20, 4294967168  ;;  %p17_p10 = scmp.ge.s32.totalorder %s2524_s23, 4   ;;  %s3079_s12 = smov %s2427_s13 }
 0x50b   : > { %s3080_s13 = smov %s2431_s14  ;;  %s3081_s14 = smov %s2560_s11 }
 0x50c   : > { %s3082_s15 = smov %s2524_s23  ;;  %19 = sbr.rel (!%p17_p10) target bundleno = 6 (0x6), region = 81 }
 0x513   :  { %2060 = vsyncpa [#allocation4], 1 }
 0x514   :  { %2062 = vsyncpa [#allocation4 + $0x1], 1 }
 0x515   :  { %2063 = vsyncpa [#allocation7], 1 }
 0x516   :  { %2064 = vsyncpa [#allocation5], 1 }
 0x517   :  { %2066 = vsyncpa [#allocation5 + $0x1], 1 }

</bundles_post_ra>
